<compile_context>
chip_gen: v6e
topology: v6e:2x2x1
jax: 0.10.0
libtpu: 0.0.40
codegen_flags: <defaults>
</compile_context>

<pallas_src>
import math
from functools import partial

import numpy as np
import jax
import jax.numpy as jnp
from jax.experimental import pallas as pl
from jax.experimental.pallas import tpu as pltpu


# --------------------------- kernels ---------------------------

def _rgcn_layer1_kernel(a_ref, x_ref, w_ref, b_ref, h_ref, acc_ref):
    """Row/K tile of layer 1:  H1 = relu(sum_r A_r @ X @ W1_r + B1).

    grid = (row tiles 'parallel', source-node K tiles 'arbitrary')."""
    k = pl.program_id(1)

    @pl.when(k == 0)
    def _init():
        acc_ref[...] = jnp.zeros_like(acc_ref)

    n_rel = a_ref.shape[0]
    x = x_ref[...]                                  # (tile_k, f_in) bf16
    part = jnp.zeros(acc_ref.shape, jnp.float32)
    for r in range(n_rel):                          # R is tiny and static
        z_r = jnp.dot(a_ref[r], x, preferred_element_type=jnp.float32)
        part = part + jnp.dot(z_r.astype(w_ref.dtype), w_ref[r],
                              preferred_element_type=jnp.float32)
    acc_ref[...] += part

    @pl.when(k == pl.num_programs(1) - 1)
    def _finalize():
        h_ref[...] = jnp.maximum(acc_ref[...] + b_ref[...], 0.0).astype(h_ref.dtype)


def _rgcn_layer2_pool_kernel(a_ref, h1_ref, w_ref, b_ref, pool_ref, hg_ref, acc_ref):
    """Row/K tile of layer 2 + per-row-tile pooled partial readout.

    Emits hg_part[i] = POOL[:, tile_i] @ H2[tile_i]; the sum over row tiles and the
    classifier Linear are trivial XLA ops in the wrapper (megacore-safe: the 'parallel'
    row axis owns disjoint output blocks, no shared accumulator)."""
    k = pl.program_id(1)

    @pl.when(k == 0)
    def _init():
        acc_ref[...] = jnp.zeros_like(acc_ref)

    n_rel = a_ref.shape[0]
    h1 = h1_ref[...]                                # (tile_k, f_hid) bf16
    part = jnp.zeros(acc_ref.shape, jnp.float32)
    for r in range(n_rel):
        z_r = jnp.dot(a_ref[r], h1, preferred_element_type=jnp.float32)
        part = part + jnp.dot(z_r.astype(w_ref.dtype), w_ref[r],
                              preferred_element_type=jnp.float32)
    acc_ref[...] += part

    @pl.when(k == pl.num_programs(1) - 1)
    def _finalize():
        h2 = acc_ref[...] + b_ref[...]              # (tile_m, f_hid) f32
        hg_ref[0] = jnp.dot(pool_ref[0], h2, preferred_element_type=jnp.float32)


# --------------------------- wrapper ---------------------------

def _pad_to(a, shape):
    return jnp.pad(a, [(0, t - s) for s, t in zip(a.shape, shape)])


@partial(jax.jit, static_argnames=("tile_m", "tile_k"))
def hetero_classifier_forward(a_norm, x, w1, b1_node, w2, b2_node, pool, wc, bc,
                              *, tile_m=128, tile_k=128):
    """a_norm: (R,N,N) f32; x: (N,F_in); w1: (R,F_in,F_hid); b1_node: (N,F_hid);
       w2: (R,F_hid,F_hid); b2_node: (N,F_hid); pool: (G,N); wc: (F_hid,C); bc: (C,)."""
    n_rel, n, _ = a_norm.shape
    f_in = x.shape[1]
    f_hid = w1.shape[2]
    n_graphs = pool.shape[0]
    n_classes = wc.shape[1]

    blk = math.lcm(tile_m, tile_k)
    n_pad = blk * pl.cdiv(n, blk)
    g_pad = 8 * pl.cdiv(n_graphs, 8)
    n_tiles_m = n_pad // tile_m
    n_tiles_k = n_pad // tile_k

    # bf16 for the big streams (A, X, H1, W); f32 biases / pooling / classifier.
    a_p = _pad_to(a_norm, (n_rel, n_pad, n_pad)).astype(jnp.bfloat16)
    x_p = _pad_to(x, (n_pad, f_in)).astype(jnp.bfloat16)
    w1_p = jnp.asarray(w1, jnp.bfloat16)
    w2_p = jnp.asarray(w2, jnp.bfloat16)
    b1_p = _pad_to(b1_node, (n_pad, f_hid)).astype(jnp.float32)
    b2_p = _pad_to(b2_node, (n_pad, f_hid)).astype(jnp.float32)
    pool_p = _pad_to(pool, (g_pad, n_pad)).astype(jnp.float32)
    # (n_tiles_m, g_pad, tile_m) pooling blocks: wrapper-side layout plumbing only.
    pool_tiles = pool_p.reshape(g_pad, n_tiles_m, tile_m).transpose(1, 0, 2)

    # Explicit VMEM budget: double-buffered streamed tiles + resident weights + scratch,
    # with headroom; clamped so it stays within v7x's 64 MiB physical VMEM.
    step_bytes = (n_rel * tile_m * tile_k * 2        # A tile (bf16)
                  + tile_k * max(f_in, f_hid) * 2    # X / H1 tile (bf16)
                  + n_rel * f_hid * f_hid * 2        # resident W stack
                  + 3 * tile_m * f_hid * 4           # bias + out + acc scratch
                  + g_pad * (tile_m + f_hid) * 4)    # pooling block + hg partial
    vmem_limit = int(min(max(4 * step_bytes, 32 * 2 ** 20), 48 * 2 ** 20))
    cparams = pltpu.CompilerParams(dimension_semantics=("parallel", "arbitrary"),
                                   vmem_limit_bytes=vmem_limit)

    # ---- stage 1: H1 = relu(RGCN layer 1), row tiles parallel, K tiles accumulated ----
    h1 = pl.pallas_call(
        _rgcn_layer1_kernel,
        out_shape=jax.ShapeDtypeStruct((n_pad, f_hid), jnp.bfloat16),
        grid_spec=pltpu.PrefetchScalarGridSpec(
            num_scalar_prefetch=0,
            grid=(n_tiles_m, n_tiles_k),
            in_specs=[
                pl.BlockSpec((n_rel, tile_m, tile_k), lambda i, k: (0, i, k)),  # A tile
                pl.BlockSpec((tile_k, f_in), lambda i, k: (k, 0)),              # X K-tile
                pl.BlockSpec((n_rel, f_in, f_hid), lambda i, k: (0, 0, 0)),     # W1 stack
                pl.BlockSpec((tile_m, f_hid), lambda i, k: (i, 0)),             # bias tile
            ],
            out_specs=pl.BlockSpec((tile_m, f_hid), lambda i, k: (i, 0)),
            scratch_shapes=[pltpu.VMEM((tile_m, f_hid), jnp.float32)],
        ),
        compiler_params=cparams,
    )(a_p, x_p, w1_p, b1_p)

    # ---- stage 2: RGCN layer 2 + per-row-tile pooled partial readout ----
    hg_parts = pl.pallas_call(
        _rgcn_layer2_pool_kernel,
        out_shape=jax.ShapeDtypeStruct((n_tiles_m, g_pad, f_hid), jnp.float32),
        grid_spec=pltpu.PrefetchScalarGridSpec(
            num_scalar_prefetch=0,
            grid=(n_tiles_m, n_tiles_k),
            in_specs=[
                pl.BlockSpec((n_rel, tile_m, tile_k), lambda i, k: (0, i, k)),  # A tile
                pl.BlockSpec((tile_k, f_hid), lambda i, k: (k, 0)),             # H1 K-tile
                pl.BlockSpec((n_rel, f_hid, f_hid), lambda i, k: (0, 0, 0)),    # W2 stack
                pl.BlockSpec((tile_m, f_hid), lambda i, k: (i, 0)),             # bias tile
                pl.BlockSpec((1, g_pad, tile_m), lambda i, k: (i, 0, 0)),       # pool block
            ],
            out_specs=pl.BlockSpec((1, g_pad, f_hid), lambda i, k: (i, 0, 0)),
            scratch_shapes=[pltpu.VMEM((tile_m, f_hid), jnp.float32)],
        ),
        compiler_params=cparams,
    )(a_p, h1, w2_p, b2_p, pool_tiles)

    # Tiny epilogue in XLA: reduce the per-tile pooled partials and apply the classifier.
    hg = jnp.sum(hg_parts, axis=0)[:n_graphs]                 # (G, F_hid)
    logits = hg @ wc + bc                                     # (G, C)
    return logits[:, :n_classes]


# --------------------------- demo / correctness gate ---------------------------

if __name__ == "__main__":
    key = jax.random.PRNGKey(0)

    # Deterministic heterograph batch: 4 graphs, each with 30 'user' + 30 'item' nodes
    # (N = 240 flattened nodes -> padded to 256 = 2 row tiles x 2 K tiles).
    N_GRAPHS, USERS, ITEMS = 4, 30, 30
    NPG = USERS + ITEMS
    N = N_GRAPHS * NPG
    N_TYPES = 2
    node_type = np.tile(np.array([0] * USERS + [1] * ITEMS, np.int32), N_GRAPHS)
    graph_id = np.repeat(np.arange(N_GRAPHS, dtype=np.int32), NPG)

    IN_DIM, HID_DIM, N_CLASSES = 8, 32, 4

    # relations: buys (user->item), rev_buys (item->user), follows (user->user)
    u = np.arange(USERS)
    buys_src = np.concatenate([u, u, u])
    buys_dst = USERS + np.concatenate([u % ITEMS, (3 * u + 1) % ITEMS, (7 * u + 5) % ITEMS])
    rel_edges = [(buys_src, buys_dst), (buys_dst, buys_src), (u, (u + 1) % USERS)]
    rel_dst_type = np.array([1, 0, 0], np.int32)
    R = len(rel_edges)

    adj = np.zeros((R, N, N), np.float32)             # adj[r, dst, src]
    for r, (src, dst) in enumerate(rel_edges):
        for g in range(N_GRAPHS):
            off = g * NPG
            adj[r, dst + off, src + off] = 1.0
    out_deg = np.maximum(adj.sum(axis=1), 1.0)        # (R, N) per-src out-degree
    in_deg = np.maximum(adj.sum(axis=2), 1.0)         # (R, N) per-dst in-degree
    # DGL GraphConv(norm='both') normalization (degree clamp matches this reference, not
    # DGL's zero-in-degree error).
    a_norm = jnp.asarray(adj / np.sqrt(in_deg[:, :, None] * out_deg[:, None, :]))

    # Parameters.
    ks = jax.random.split(key, 7)
    s = 0.2
    w1 = s * jax.random.normal(ks[0], (R, IN_DIM, HID_DIM), jnp.float32)
    b1 = s * jax.random.normal(ks[1], (R, HID_DIM), jnp.float32)
    w2 = s * jax.random.normal(ks[2], (R, HID_DIM, HID_DIM), jnp.float32)
    b2 = s * jax.random.normal(ks[3], (R, HID_DIM), jnp.float32)
    x = jax.random.normal(ks[4], (N, IN_DIM), jnp.float32)
    wc = s * jax.random.normal(ks[5], (HID_DIM, N_CLASSES), jnp.float32)
    bc = s * jax.random.normal(ks[6], (N_CLASSES,), jnp.float32)

    # HeteroGraphConv(aggregate='sum'): per-node bias = sum of biases of relations whose
    # destination ntype matches the node's type.
    def per_node_bias(b):
        bn = jnp.zeros((N, HID_DIM), jnp.float32)
        for rr in range(R):
            mask = jnp.asarray((node_type == rel_dst_type[rr]).astype(np.float32))
            bn = bn + mask[:, None] * b[rr][None, :]
        return bn

    b1_node, b2_node = per_node_bias(b1), per_node_bias(b2)

    # Readout: hg[g] = sum over ntypes of the per-graph mean over that type's nodes.
    pool_np = np.zeros((N_GRAPHS, N), np.float32)
    for g in range(N_GRAPHS):
        for t in range(N_TYPES):
            mask = (graph_id == g) & (node_type == t)
            pool_np[g, mask] = 1.0 / max(int(mask.sum()), 1)
    pool = jnp.asarray(pool_np)

    # Pure-JAX f32 reference (same math as HeteroClassifier.forward).
    def rgcn_layer(h, w, b_node):
        out = b_node
        for rr in range(R):
            out = out + a_norm[rr] @ h @ w[rr]
        return out

    h1_ref_v = jax.nn.relu(rgcn_layer(x, w1, b1_node))
    h2_ref_v = rgcn_layer(h1_ref_v, w2, b2_node)
    logits_ref = pool @ h2_ref_v @ wc + bc

    # Pallas kernel (use tile_m=tile_k=256 on v6e/v7x for the 256-deep MXU).
    logits = hetero_classifier_forward(a_norm, x, w1, b1_node, w2, b2_node, pool, wc, bc,
                                       tile_m=128, tile_k=128)
    logits = jax.block_until_ready(logits)

    assert logits.shape == (N_GRAPHS, N_CLASSES)
    err = float(jnp.max(jnp.abs(logits - logits_ref)))
    # Tolerance covers bf16 A / activations / weights (f32 accumulation) vs f32 reference.
    assert jnp.allclose(logits, logits_ref, atol=8e-2, rtol=8e-2), err

    print("KERNEL_OK")
</pallas_src>

<mosaic_0001>
module attributes {stable_mosaic.version = 11 : i64} {
  func.func @_rgcn_layer1_kernel(%arg0: i32, %arg1: i32, %arg2: memref<3x128x128xbf16, #tpu.memory_space<vmem>>, %arg3: memref<128x8xbf16, #tpu.memory_space<vmem>>, %arg4: memref<3x8x32xbf16, #tpu.memory_space<vmem>>, %arg5: memref<128x32xf32, #tpu.memory_space<vmem>>, %arg6: memref<128x32xbf16, #tpu.memory_space<vmem>>, %arg7: memref<128x32xf32, #tpu.memory_space<vmem>>) attributes {dimension_semantics = [#tpu.dimension_semantics<parallel>, #tpu.dimension_semantics<arbitrary>], iteration_bounds = array<i64: 2, 2>, scalar_prefetch = 0 : i64, scratch_operands = 1 : i64, tpu.core_type = #tpu.core_type<tc>, window_params = [{transform_indices = @transform_0, window_bounds = array<i64: 3, 128, 128>}, {transform_indices = @transform_1, window_bounds = array<i64: 128, 8>}, {pipeline_mode = #tpu.pipeline_mode<synchronous>, transform_indices = @transform_2, window_bounds = array<i64: 3, 8, 32>}, {transform_indices = @transform_3, window_bounds = array<i64: 128, 32>}, {transform_indices = @transform_4, window_bounds = array<i64: 128, 32>}]} {
    %c0_i32 = arith.constant 0 : i32
    %0 = arith.cmpi eq, %arg1, %c0_i32 : i32
    %1 = arith.extui %0 : i1 to i32
    %c0_i32_0 = arith.constant 0 : i32
    %2 = arith.cmpi ne, %1, %c0_i32_0 : i32
    scf.if %2 {
      %cst_29 = arith.constant 0.000000e+00 : f32
      %35 = vector.broadcast %cst_29 : f32 to vector<128x32xf32>
      %c0_30 = arith.constant 0 : index
      %c0_31 = arith.constant 0 : index
      %36 = vector.load %arg7[%c0_30, %c0_31] : memref<128x32xf32, #tpu.memory_space<vmem>>, vector<128x32xf32>
      tpu.vector_store %arg7[%c0_30, %c0_31], %35 {strides = array<i32>} : memref<128x32xf32, #tpu.memory_space<vmem>>, vector<128x32xf32>,
    } else {
    }
    %c0 = arith.constant 0 : index
    %c0_1 = arith.constant 0 : index
    %3 = vector.load %arg3[%c0, %c0_1] : memref<128x8xbf16, #tpu.memory_space<vmem>>, vector<128x8xbf16>
    %cst = arith.constant 0.000000e+00 : f32
    %4 = vector.broadcast %cst : f32 to vector<128x32xf32>
    %c0_2 = arith.constant 0 : index
    %c0_3 = arith.constant 0 : index
    %c0_4 = arith.constant 0 : index
    %5 = vector.load %arg2[%c0_2, %c0_3, %c0_4] : memref<3x128x128xbf16, #tpu.memory_space<vmem>>, vector<1x128x128xbf16>
    %6 = vector.shape_cast %5 : vector<1x128x128xbf16> to vector<128x128xbf16>
    %cst_5 = arith.constant dense<0.000000e+00> : vector<128x8xf32>
    %7 = tpu.matmul %6, %3, %cst_5 {dimension_numbers = #tpu.dot_dimension_numbers<[1], [0], [0], [1], [0, 0, 1, 1], [], []>} : vector<128x128xbf16>, vector<128x8xbf16>, vector<128x8xf32> -> vector<128x8xf32>
    %8 = arith.truncf %7 : vector<128x8xf32> to vector<128x8xbf16>
    %c0_6 = arith.constant 0 : index
    %c0_7 = arith.constant 0 : index
    %c0_8 = arith.constant 0 : index
    %9 = vector.load %arg4[%c0_6, %c0_7, %c0_8] : memref<3x8x32xbf16, #tpu.memory_space<vmem>>, vector<1x8x32xbf16>
    %10 = vector.shape_cast %9 : vector<1x8x32xbf16> to vector<8x32xbf16>
    %cst_9 = arith.constant dense<0.000000e+00> : vector<128x32xf32>
    %11 = tpu.matmul %8, %10, %cst_9 {dimension_numbers = #tpu.dot_dimension_numbers<[1], [0], [0], [1], [0, 0, 1, 1], [], []>} : vector<128x8xbf16>, vector<8x32xbf16>, vector<128x32xf32> -> vector<128x32xf32>
    %12 = arith.addf %4, %11 : vector<128x32xf32>
    %c1 = arith.constant 1 : index
    %c0_10 = arith.constant 0 : index
    %c0_11 = arith.constant 0 : index
    %13 = vector.load %arg2[%c1, %c0_10, %c0_11] : memref<3x128x128xbf16, #tpu.memory_space<vmem>>, vector<1x128x128xbf16>
    %14 = vector.shape_cast %13 : vector<1x128x128xbf16> to vector<128x128xbf16>
    %cst_12 = arith.constant dense<0.000000e+00> : vector<128x8xf32>
    %15 = tpu.matmul %14, %3, %cst_12 {dimension_numbers = #tpu.dot_dimension_numbers<[1], [0], [0], [1], [0, 0, 1, 1], [], []>} : vector<128x128xbf16>, vector<128x8xbf16>, vector<128x8xf32> -> vector<128x8xf32>
    %16 = arith.truncf %15 : vector<128x8xf32> to vector<128x8xbf16>
    %c1_13 = arith.constant 1 : index
    %c0_14 = arith.constant 0 : index
    %c0_15 = arith.constant 0 : index
    %17 = vector.load %arg4[%c1_13, %c0_14, %c0_15] : memref<3x8x32xbf16, #tpu.memory_space<vmem>>, vector<1x8x32xbf16>
    %18 = vector.shape_cast %17 : vector<1x8x32xbf16> to vector<8x32xbf16>
    %cst_16 = arith.constant dense<0.000000e+00> : vector<128x32xf32>
    %19 = tpu.matmul %16, %18, %cst_16 {dimension_numbers = #tpu.dot_dimension_numbers<[1], [0], [0], [1], [0, 0, 1, 1], [], []>} : vector<128x8xbf16>, vector<8x32xbf16>, vector<128x32xf32> -> vector<128x32xf32>
    %20 = arith.addf %12, %19 : vector<128x32xf32>
    %c2 = arith.constant 2 : index
    %c0_17 = arith.constant 0 : index
    %c0_18 = arith.constant 0 : index
    %21 = vector.load %arg2[%c2, %c0_17, %c0_18] : memref<3x128x128xbf16, #tpu.memory_space<vmem>>, vector<1x128x128xbf16>
    %22 = vector.shape_cast %21 : vector<1x128x128xbf16> to vector<128x128xbf16>
    %cst_19 = arith.constant dense<0.000000e+00> : vector<128x8xf32>
    %23 = tpu.matmul %22, %3, %cst_19 {dimension_numbers = #tpu.dot_dimension_numbers<[1], [0], [0], [1], [0, 0, 1, 1], [], []>} : vector<128x128xbf16>, vector<128x8xbf16>, vector<128x8xf32> -> vector<128x8xf32>
    %24 = arith.truncf %23 : vector<128x8xf32> to vector<128x8xbf16>
    %c2_20 = arith.constant 2 : index
    %c0_21 = arith.constant 0 : index
    %c0_22 = arith.constant 0 : index
    %25 = vector.load %arg4[%c2_20, %c0_21, %c0_22] : memref<3x8x32xbf16, #tpu.memory_space<vmem>>, vector<1x8x32xbf16>
    %26 = vector.shape_cast %25 : vector<1x8x32xbf16> to vector<8x32xbf16>
    %cst_23 = arith.constant dense<0.000000e+00> : vector<128x32xf32>
    %27 = tpu.matmul %24, %26, %cst_23 {dimension_numbers = #tpu.dot_dimension_numbers<[1], [0], [0], [1], [0, 0, 1, 1], [], []>} : vector<128x8xbf16>, vector<8x32xbf16>, vector<128x32xf32> -> vector<128x32xf32>
    %28 = arith.addf %20, %27 : vector<128x32xf32>
    %c0_24 = arith.constant 0 : index
    %c0_25 = arith.constant 0 : index
    %29 = vector.load %arg7[%c0_24, %c0_25] : memref<128x32xf32, #tpu.memory_space<vmem>>, vector<128x32xf32>
    %30 = arith.addf %29, %28 : vector<128x32xf32>
    %c0_26 = arith.constant 0 : index
    %c0_27 = arith.constant 0 : index
    %31 = vector.load %arg7[%c0_26, %c0_27] : memref<128x32xf32, #tpu.memory_space<vmem>>, vector<128x32xf32>
    tpu.vector_store %arg7[%c0_26, %c0_27], %30 {strides = array<i32>} : memref<128x32xf32, #tpu.memory_space<vmem>>, vector<128x32xf32>,
    %c1_i32 = arith.constant 1 : i32
    %32 = arith.cmpi eq, %arg1, %c1_i32 : i32
    %33 = arith.extui %32 : i1 to i32
    %c0_i32_28 = arith.constant 0 : i32
    %34 = arith.cmpi ne, %33, %c0_i32_28 : i32
    scf.if %34 {
      %c0_29 = arith.constant 0 : index
      %c0_30 = arith.constant 0 : index
      %35 = vector.load %arg7[%c0_29, %c0_30] : memref<128x32xf32, #tpu.memory_space<vmem>>, vector<128x32xf32>
      %c0_31 = arith.constant 0 : index
      %c0_32 = arith.constant 0 : index
      %36 = vector.load %arg5[%c0_31, %c0_32] : memref<128x32xf32, #tpu.memory_space<vmem>>, vector<128x32xf32>
      %37 = arith.addf %35, %36 : vector<128x32xf32>
      %cst_33 = arith.constant 0.000000e+00 : f32
      %38 = vector.broadcast %cst_33 : f32 to vector<128x32xf32>
      %39 = arith.maximumf %37, %38 : vector<128x32xf32>
      %40 = arith.truncf %39 : vector<128x32xf32> to vector<128x32xbf16>
      %c0_34 = arith.constant 0 : index
      %c0_35 = arith.constant 0 : index
      %41 = vector.load %arg6[%c0_34, %c0_35] : memref<128x32xbf16, #tpu.memory_space<vmem>>, vector<128x32xbf16>
      tpu.vector_store %arg6[%c0_34, %c0_35], %40 {strides = array<i32>} : memref<128x32xbf16, #tpu.memory_space<vmem>>, vector<128x32xbf16>,
    } else {
    }
    return
  }
  func.func @transform_0(%arg0: i32, %arg1: i32) -> (i32, i32, i32) {
    %c0_i32 = arith.constant 0 : i32
    %c0_i32_0 = arith.constant 0 : i32
    return %c0_i32, %arg0, %arg1 : i32, i32, i32
  }
  func.func @transform_1(%arg0: i32, %arg1: i32) -> (i32, i32) {
    %c0_i32 = arith.constant 0 : i32
    %c0_i32_0 = arith.constant 0 : i32
    return %arg1, %c0_i32 : i32, i32
  }
  func.func @transform_2(%arg0: i32, %arg1: i32) -> (i32, i32, i32) {
    %c0_i32 = arith.constant 0 : i32
    %c0_i32_0 = arith.constant 0 : i32
    %c0_i32_1 = arith.constant 0 : i32
    %c0_i32_2 = arith.constant 0 : i32
    return %c0_i32, %c0_i32_0, %c0_i32_1 : i32, i32, i32
  }
  func.func @transform_3(%arg0: i32, %arg1: i32) -> (i32, i32) {
    %c0_i32 = arith.constant 0 : i32
    %c0_i32_0 = arith.constant 0 : i32
    return %arg0, %c0_i32 : i32, i32
  }
  func.func @transform_4(%arg0: i32, %arg1: i32) -> (i32, i32) {
    %c0_i32 = arith.constant 0 : i32
    %c0_i32_0 = arith.constant 0 : i32
    return %arg0, %c0_i32 : i32, i32
  }
}

module attributes {stable_mosaic.version = 11 : i64} {
  func.func @_rgcn_layer2_pool_kernel(%arg0: i32, %arg1: i32, %arg2: memref<3x128x128xbf16, #tpu.memory_space<vmem>>, %arg3: memref<128x32xbf16, #tpu.memory_space<vmem>>, %arg4: memref<3x32x32xbf16, #tpu.memory_space<vmem>>, %arg5: memref<128x32xf32, #tpu.memory_space<vmem>>, %arg6: memref<1x8x128xf32, #tpu.memory_space<vmem>>, %arg7: memref<1x8x32xf32, #tpu.memory_space<vmem>>, %arg8: memref<128x32xf32, #tpu.memory_space<vmem>>) attributes {dimension_semantics = [#tpu.dimension_semantics<parallel>, #tpu.dimension_semantics<arbitrary>], iteration_bounds = array<i64: 2, 2>, scalar_prefetch = 0 : i64, scratch_operands = 1 : i64, tpu.core_type = #tpu.core_type<tc>, window_params = [{transform_indices = @transform_0, window_bounds = array<i64: 3, 128, 128>}, {transform_indices = @transform_1, window_bounds = array<i64: 128, 32>}, {pipeline_mode = #tpu.pipeline_mode<synchronous>, transform_indices = @transform_2, window_bounds = array<i64: 3, 32, 32>}, {transform_indices = @transform_3, window_bounds = array<i64: 128, 32>}, {transform_indices = @transform_4, window_bounds = array<i64: 1, 8, 128>}, {transform_indices = @transform_5, window_bounds = array<i64: 1, 8, 32>}]} {
    %c0_i32 = arith.constant 0 : i32
    %0 = arith.cmpi eq, %arg1, %c0_i32 : i32
    %1 = arith.extui %0 : i1 to i32
    %c0_i32_0 = arith.constant 0 : i32
    %2 = arith.cmpi ne, %1, %c0_i32_0 : i32
    scf.if %2 {
      %cst_29 = arith.constant 0.000000e+00 : f32
      %35 = vector.broadcast %cst_29 : f32 to vector<128x32xf32>
      %c0_30 = arith.constant 0 : index
      %c0_31 = arith.constant 0 : index
      %36 = vector.load %arg8[%c0_30, %c0_31] : memref<128x32xf32, #tpu.memory_space<vmem>>, vector<128x32xf32>
      tpu.vector_store %arg8[%c0_30, %c0_31], %35 {strides = array<i32>} : memref<128x32xf32, #tpu.memory_space<vmem>>, vector<128x32xf32>,
    } else {
    }
    %c0 = arith.constant 0 : index
    %c0_1 = arith.constant 0 : index
    %3 = vector.load %arg3[%c0, %c0_1] : memref<128x32xbf16, #tpu.memory_space<vmem>>, vector<128x32xbf16>
    %cst = arith.constant 0.000000e+00 : f32
    %4 = vector.broadcast %cst : f32 to vector<128x32xf32>
    %c0_2 = arith.constant 0 : index
    %c0_3 = arith.constant 0 : index
    %c0_4 = arith.constant 0 : index
    %5 = vector.load %arg2[%c0_2, %c0_3, %c0_4] : memref<3x128x128xbf16, #tpu.memory_space<vmem>>, vector<1x128x128xbf16>
    %6 = vector.shape_cast %5 : vector<1x128x128xbf16> to vector<128x128xbf16>
    %cst_5 = arith.constant dense<0.000000e+00> : vector<128x32xf32>
    %7 = tpu.matmul %6, %3, %cst_5 {dimension_numbers = #tpu.dot_dimension_numbers<[1], [0], [0], [1], [0, 0, 1, 1], [], []>} : vector<128x128xbf16>, vector<128x32xbf16>, vector<128x32xf32> -> vector<128x32xf32>
    %8 = arith.truncf %7 : vector<128x32xf32> to vector<128x32xbf16>
    %c0_6 = arith.constant 0 : index
    %c0_7 = arith.constant 0 : index
    %c0_8 = arith.constant 0 : index
    %9 = vector.load %arg4[%c0_6, %c0_7, %c0_8] : memref<3x32x32xbf16, #tpu.memory_space<vmem>>, vector<1x32x32xbf16>
    %10 = vector.shape_cast %9 : vector<1x32x32xbf16> to vector<32x32xbf16>
    %cst_9 = arith.constant dense<0.000000e+00> : vector<128x32xf32>
    %11 = tpu.matmul %8, %10, %cst_9 {dimension_numbers = #tpu.dot_dimension_numbers<[1], [0], [0], [1], [0, 0, 1, 1], [], []>} : vector<128x32xbf16>, vector<32x32xbf16>, vector<128x32xf32> -> vector<128x32xf32>
    %12 = arith.addf %4, %11 : vector<128x32xf32>
    %c1 = arith.constant 1 : index
    %c0_10 = arith.constant 0 : index
    %c0_11 = arith.constant 0 : index
    %13 = vector.load %arg2[%c1, %c0_10, %c0_11] : memref<3x128x128xbf16, #tpu.memory_space<vmem>>, vector<1x128x128xbf16>
    %14 = vector.shape_cast %13 : vector<1x128x128xbf16> to vector<128x128xbf16>
    %cst_12 = arith.constant dense<0.000000e+00> : vector<128x32xf32>
    %15 = tpu.matmul %14, %3, %cst_12 {dimension_numbers = #tpu.dot_dimension_numbers<[1], [0], [0], [1], [0, 0, 1, 1], [], []>} : vector<128x128xbf16>, vector<128x32xbf16>, vector<128x32xf32> -> vector<128x32xf32>
    %16 = arith.truncf %15 : vector<128x32xf32> to vector<128x32xbf16>
    %c1_13 = arith.constant 1 : index
    %c0_14 = arith.constant 0 : index
    %c0_15 = arith.constant 0 : index
    %17 = vector.load %arg4[%c1_13, %c0_14, %c0_15] : memref<3x32x32xbf16, #tpu.memory_space<vmem>>, vector<1x32x32xbf16>
    %18 = vector.shape_cast %17 : vector<1x32x32xbf16> to vector<32x32xbf16>
    %cst_16 = arith.constant dense<0.000000e+00> : vector<128x32xf32>
    %19 = tpu.matmul %16, %18, %cst_16 {dimension_numbers = #tpu.dot_dimension_numbers<[1], [0], [0], [1], [0, 0, 1, 1], [], []>} : vector<128x32xbf16>, vector<32x32xbf16>, vector<128x32xf32> -> vector<128x32xf32>
    %20 = arith.addf %12, %19 : vector<128x32xf32>
    %c2 = arith.constant 2 : index
    %c0_17 = arith.constant 0 : index
    %c0_18 = arith.constant 0 : index
    %21 = vector.load %arg2[%c2, %c0_17, %c0_18] : memref<3x128x128xbf16, #tpu.memory_space<vmem>>, vector<1x128x128xbf16>
    %22 = vector.shape_cast %21 : vector<1x128x128xbf16> to vector<128x128xbf16>
    %cst_19 = arith.constant dense<0.000000e+00> : vector<128x32xf32>
    %23 = tpu.matmul %22, %3, %cst_19 {dimension_numbers = #tpu.dot_dimension_numbers<[1], [0], [0], [1], [0, 0, 1, 1], [], []>} : vector<128x128xbf16>, vector<128x32xbf16>, vector<128x32xf32> -> vector<128x32xf32>
    %24 = arith.truncf %23 : vector<128x32xf32> to vector<128x32xbf16>
    %c2_20 = arith.constant 2 : index
    %c0_21 = arith.constant 0 : index
    %c0_22 = arith.constant 0 : index
    %25 = vector.load %arg4[%c2_20, %c0_21, %c0_22] : memref<3x32x32xbf16, #tpu.memory_space<vmem>>, vector<1x32x32xbf16>
    %26 = vector.shape_cast %25 : vector<1x32x32xbf16> to vector<32x32xbf16>
    %cst_23 = arith.constant dense<0.000000e+00> : vector<128x32xf32>
    %27 = tpu.matmul %24, %26, %cst_23 {dimension_numbers = #tpu.dot_dimension_numbers<[1], [0], [0], [1], [0, 0, 1, 1], [], []>} : vector<128x32xbf16>, vector<32x32xbf16>, vector<128x32xf32> -> vector<128x32xf32>
    %28 = arith.addf %20, %27 : vector<128x32xf32>
    %c0_24 = arith.constant 0 : index
    %c0_25 = arith.constant 0 : index
    %29 = vector.load %arg8[%c0_24, %c0_25] : memref<128x32xf32, #tpu.memory_space<vmem>>, vector<128x32xf32>
    %30 = arith.addf %29, %28 : vector<128x32xf32>
    %c0_26 = arith.constant 0 : index
    %c0_27 = arith.constant 0 : index
    %31 = vector.load %arg8[%c0_26, %c0_27] : memref<128x32xf32, #tpu.memory_space<vmem>>, vector<128x32xf32>
    tpu.vector_store %arg8[%c0_26, %c0_27], %30 {strides = array<i32>} : memref<128x32xf32, #tpu.memory_space<vmem>>, vector<128x32xf32>,
    %c1_i32 = arith.constant 1 : i32
    %32 = arith.cmpi eq, %arg1, %c1_i32 : i32
    %33 = arith.extui %32 : i1 to i32
    %c0_i32_28 = arith.constant 0 : i32
    %34 = arith.cmpi ne, %33, %c0_i32_28 : i32
    scf.if %34 {
      %c0_29 = arith.constant 0 : index
      %c0_30 = arith.constant 0 : index
      %35 = vector.load %arg8[%c0_29, %c0_30] : memref<128x32xf32, #tpu.memory_space<vmem>>, vector<128x32xf32>
      %c0_31 = arith.constant 0 : index
      %c0_32 = arith.constant 0 : index
      %36 = vector.load %arg5[%c0_31, %c0_32] : memref<128x32xf32, #tpu.memory_space<vmem>>, vector<128x32xf32>
      %37 = arith.addf %35, %36 : vector<128x32xf32>
      %c0_33 = arith.constant 0 : index
      %c0_34 = arith.constant 0 : index
      %c0_35 = arith.constant 0 : index
      %38 = vector.load %arg6[%c0_33, %c0_34, %c0_35] : memref<1x8x128xf32, #tpu.memory_space<vmem>>, vector<1x8x128xf32>
      %39 = vector.shape_cast %38 : vector<1x8x128xf32> to vector<8x128xf32>
      %cst_36 = arith.constant dense<0.000000e+00> : vector<8x32xf32>
      %40 = tpu.matmul %39, %37, %cst_36 {dimension_numbers = #tpu.dot_dimension_numbers<[1], [0], [0], [1], [0, 0, 1, 1], [], []>} : vector<8x128xf32>, vector<128x32xf32>, vector<8x32xf32> -> vector<8x32xf32>
      %c0_37 = arith.constant 0 : index
      %c0_38 = arith.constant 0 : index
      %c0_39 = arith.constant 0 : index
      %41 = vector.load %arg7[%c0_37, %c0_38, %c0_39] : memref<1x8x32xf32, #tpu.memory_space<vmem>>, vector<1x8x32xf32>
      %42 = vector.shape_cast %41 : vector<1x8x32xf32> to vector<8x32xf32>
      %43 = vector.shape_cast %40 : vector<8x32xf32> to vector<1x8x32xf32>
      tpu.vector_store %arg7[%c0_37, %c0_38, %c0_39], %43 {strides = array<i32>} : memref<1x8x32xf32, #tpu.memory_space<vmem>>, vector<1x8x32xf32>,
    } else {
    }
    return
  }
  func.func @transform_0(%arg0: i32, %arg1: i32) -> (i32, i32, i32) {
    %c0_i32 = arith.constant 0 : i32
    %c0_i32_0 = arith.constant 0 : i32
    return %c0_i32, %arg0, %arg1 : i32, i32, i32
  }
  func.func @transform_1(%arg0: i32, %arg1: i32) -> (i32, i32) {
    %c0_i32 = arith.constant 0 : i32
    %c0_i32_0 = arith.constant 0 : i32
    return %arg1, %c0_i32 : i32, i32
  }
  func.func @transform_2(%arg0: i32, %arg1: i32) -> (i32, i32, i32) {
    %c0_i32 = arith.constant 0 : i32
    %c0_i32_0 = arith.constant 0 : i32
    %c0_i32_1 = arith.constant 0 : i32
    %c0_i32_2 = arith.constant 0 : i32
    return %c0_i32, %c0_i32_0, %c0_i32_1 : i32, i32, i32
  }
  func.func @transform_3(%arg0: i32, %arg1: i32) -> (i32, i32) {
    %c0_i32 = arith.constant 0 : i32
    %c0_i32_0 = arith.constant 0 : i32
    return %arg0, %c0_i32 : i32, i32
  }
  func.func @transform_4(%arg0: i32, %arg1: i32) -> (i32, i32, i32) {
    %c0_i32 = arith.constant 0 : i32
    %c0_i32_0 = arith.constant 0 : i32
    %c0_i32_1 = arith.constant 0 : i32
    return %arg0, %c0_i32, %c0_i32_0 : i32, i32, i32
  }
  func.func @transform_5(%arg0: i32, %arg1: i32) -> (i32, i32, i32) {
    %c0_i32 = arith.constant 0 : i32
    %c0_i32_0 = arith.constant 0 : i32
    %c0_i32_1 = arith.constant 0 : i32
    return %arg0, %c0_i32, %c0_i32_0 : i32, i32, i32
  }
}

</mosaic_0001>

<bundles_post_ra>
// kernel: hetero_classifier_forward.2
= control target key start
LH: loop header
LB: loop body
LE: loop exit
PB: predicated region body
PF: predicated region fallthrough
CT: control target
= control target key end

     0   :  { %s2322_s15 = smov 0   ;;  %s2324_s16 = smov 0   ;;  %s2805_s0 = inlined_call_operand.vmem [shape: bf16[3,256,256], index: 0, kind: input, shape index: {}]   ;;  %s2806_s1 = inlined_call_operand.vmem [shape: bf16[256,8], index: 1, kind: input, shape index: {}]   ;;  %s2807_s2 = inlined_call_operand.vmem [shape: bf16[3,8,32], index: 2, kind: input, shape index: {}]   ;;  %s2808_s3 = inlined_call_operand.vmem [shape: f32[256,32], index: 3, kind: input, shape index: {}]   ;;  %s2809_s4 = inlined_call_operand.vmem [shape: bf16[256,32], index: 4, kind: output, shape index: {}]  }
   0x1   :  { %s2326_s17 = smov 0   ;;  %s2328_s18 = smov 0  }
   0x2   :  { %s2330_s19 = smov 0   ;;  %s2332_s20 = smov 0  }
   0x3   :  { %s2334_s21 = smov 0  }
   0x4 LB: > { %s23_s22 = sadd.s32 1, %s2286_s19  ;;  %s26_s23 = sadd.s32 1, %s2290_s20  ;;  %s2294_s21 = sphi %s2334_s21, %s14_s21   ;;  %s2290_s20 = sphi %s2332_s20, %s2815_s20   ;;  %s2286_s19 = sphi %s2330_s19, %s2814_s19   ;;  %s2282_s18 = sphi %s2328_s18, %s2813_s18   ;;  %s2278_s17 = sphi %s2326_s17, %s2812_s17   ;;  %s2274_s16 = sphi %s2324_s16, %s2811_s16   ;;  %s2270_s15 = sphi %s2322_s15, %s2810_s15  }
   0x5   : > { %p24_p0 = scmp.ge.s32.totalorder %s23_s22, 2  ;;  %p42_p1 = scmp.ne.s32.totalorder %s2274_s16, %s2270_s15 }
   0x6   : > { %p43_p2 = scmp.eq.s32.totalorder %s2294_s21, 0  ;;  %s35_s27 = sadd.s32 1, %s2274_s16 }
   0x7   : > { %s2817_s22 = smov (%p24_p0, %s23_s22), 0  ;;  %s2819_s23 = smov (!%p24_p0, %s26_s23), %s2290_s20 }
   0x8   : > { %p44_p3 = por %p43_p2, %p42_p1  ;;  %p28_p4 = scmp.ge.s32.totalorder %s2819_s23, 2 }
   0x9   : > { %s31_s24 = ssub.s32 %s2286_s19, %s2817_s22  ;;  %p1783_p6 = scmp.ge.s32.totalorder %s2294_s21, 4 }
   0xa   : > { %s2821_s23 = smov (%p28_p4, %s2819_s23), 0 }
   0xb   : > { %s30_s25 = ssub.s32 %s2290_s20, %s2821_s23  ;;  %170 = sbr.rel (%p1783_p6) target bundleno = 54 (0x36), region = 20 }
   0xc   : > { %s32_s26 = sor.u32 %s31_s24, %s30_s25 }
   0xd   : > { %p33_p5 = scmp.eq.s32.totalorder %s32_s26, 0 }
   0xf   : > { %s2373_s28 = scalar_select %p33_p5, %s2274_s16, %s35_s27  }
  0x10   : > { %173 = sbr.rel (!%p44_p3) target bundleno = 54 (0x36), region = 24  ;;  %s175_s29 = sand.u32 (%p44_p3), 1, %s2274_s16  }
  0x11   : > { %s1904_s30 = sshll.u32 (%p44_p3), %s2290_s20, 5  ;;  %s2149_s5 = smul.u32 (%p44_p3), 192, %s175_s29 }
  0x12   : > { %s180_s6 = sadd.s32 (%p44_p3), %s2286_s19, %s1904_s30 }
  0x13   : > { %s1786_s7 = sshll.u32 (%p44_p3), %s180_s6, 2  ;;  %s2387_s11 = scalar_lea.vmem (%p44_p3), [#allocation3], %s2149_s5 }
  0x14   : > { %s2382_s10 = scalar_lea.vmem (%p44_p3), %s2805_s0, %s1786_s7 }
  0x15   : > { %v199_v0 = vld [vmem:[%s2382_s10] sm:$0xf]  ;;  %v201_v1 = vld [vmem:[%s2382_s10 + $0x8] sm:$0xf]  ;;  %v203_v2 = vld [vmem:[%s2382_s10 + $0x10] sm:$0xf] }
  0x16   : > { %200 = vst [vmem:[%s2387_s11] sm:$0xf] %v199_v0  ;;  %202 = vst [vmem:[%s2387_s11 + $0x4] sm:$0xf] %v201_v1  ;;  %v205_v3 = vld [vmem:[%s2382_s10 + $0x18] sm:$0xf] }
  0x17   : > { %204 = vst [vmem:[%s2387_s11 + $0x8] sm:$0xf] %v203_v2  ;;  %v207_v4 = vld [vmem:[%s2382_s10 + $0x20] sm:$0xf]  ;;  %v209_v5 = vld [vmem:[%s2382_s10 + $0x28] sm:$0xf] }
  0x18   : > { %206 = vst [vmem:[%s2387_s11 + $0xc] sm:$0xf] %v205_v3  ;;  %208 = vst [vmem:[%s2387_s11 + $0x10] sm:$0xf] %v207_v4  ;;  %v211_v6 = vld [vmem:[%s2382_s10 + $0x30] sm:$0xf] }
  0x19   : > { %210 = vst [vmem:[%s2387_s11 + $0x14] sm:$0xf] %v209_v5  ;;  %v213_v7 = vld [vmem:[%s2382_s10 + $0x38] sm:$0xf]  ;;  %v215_v8 = vld [vmem:[%s2382_s10 + $0x40] sm:$0xf] }
  0x1a   : > { %212 = vst [vmem:[%s2387_s11 + $0x18] sm:$0xf] %v211_v6  ;;  %214 = vst [vmem:[%s2387_s11 + $0x1c] sm:$0xf] %v213_v7  ;;  %v217_v9 = vld [vmem:[%s2382_s10 + $0x48] sm:$0xf] }
  0x1b   : > { %216 = vst [vmem:[%s2387_s11 + $0x20] sm:$0xf] %v215_v8  ;;  %v219_v10 = vld [vmem:[%s2382_s10 + $0x50] sm:$0xf]  ;;  %v221_v11 = vld [vmem:[%s2382_s10 + $0x58] sm:$0xf] }
  0x1c   : > { %218 = vst [vmem:[%s2387_s11 + $0x24] sm:$0xf] %v217_v9  ;;  %220 = vst [vmem:[%s2387_s11 + $0x28] sm:$0xf] %v219_v10  ;;  %v223_v12 = vld [vmem:[%s2382_s10 + $0x60] sm:$0xf] }
  0x1d   : > { %222 = vst [vmem:[%s2387_s11 + $0x2c] sm:$0xf] %v221_v11  ;;  %v225_v13 = vld [vmem:[%s2382_s10 + $0x68] sm:$0xf]  ;;  %v227_v14 = vld [vmem:[%s2382_s10 + $0x70] sm:$0xf] }
  0x1e   : > { %224 = vst [vmem:[%s2387_s11 + $0x30] sm:$0xf] %v223_v12  ;;  %226 = vst [vmem:[%s2387_s11 + $0x34] sm:$0xf] %v225_v13  ;;  %v229_v15 = vld [vmem:[%s2382_s10 + $0x78] sm:$0xf] }
  0x1f   : > { %228 = vst [vmem:[%s2387_s11 + $0x38] sm:$0xf] %v227_v14  ;;  %v231_v16 = vld [vmem:[%s2382_s10 + $0x100] sm:$0xf]  ;;  %v233_v17 = vld [vmem:[%s2382_s10 + $0x108] sm:$0xf] }
  0x20   : > { %230 = vst [vmem:[%s2387_s11 + $0x3c] sm:$0xf] %v229_v15  ;;  %232 = vst [vmem:[%s2387_s11 + $0x40] sm:$0xf] %v231_v16  ;;  %v235_v18 = vld [vmem:[%s2382_s10 + $0x110] sm:$0xf] }
  0x21   : > { %234 = vst [vmem:[%s2387_s11 + $0x44] sm:$0xf] %v233_v17  ;;  %v237_v19 = vld [vmem:[%s2382_s10 + $0x118] sm:$0xf]  ;;  %v239_v20 = vld [vmem:[%s2382_s10 + $0x120] sm:$0xf] }
  0x22   : > { %236 = vst [vmem:[%s2387_s11 + $0x48] sm:$0xf] %v235_v18  ;;  %238 = vst [vmem:[%s2387_s11 + $0x4c] sm:$0xf] %v237_v19  ;;  %v241_v21 = vld [vmem:[%s2382_s10 + $0x128] sm:$0xf] }
  0x23   : > { %240 = vst [vmem:[%s2387_s11 + $0x50] sm:$0xf] %v239_v20  ;;  %v243_v22 = vld [vmem:[%s2382_s10 + $0x130] sm:$0xf]  ;;  %v245_v23 = vld [vmem:[%s2382_s10 + $0x138] sm:$0xf] }
  0x24   : > { %242 = vst [vmem:[%s2387_s11 + $0x54] sm:$0xf] %v241_v21  ;;  %244 = vst [vmem:[%s2387_s11 + $0x58] sm:$0xf] %v243_v22  ;;  %v247_v24 = vld [vmem:[%s2382_s10 + $0x140] sm:$0xf] }
  0x25   : > { %246 = vst [vmem:[%s2387_s11 + $0x5c] sm:$0xf] %v245_v23  ;;  %v249_v25 = vld [vmem:[%s2382_s10 + $0x148] sm:$0xf]  ;;  %v251_v26 = vld [vmem:[%s2382_s10 + $0x150] sm:$0xf] }
  0x26   : > { %248 = vst [vmem:[%s2387_s11 + $0x60] sm:$0xf] %v247_v24  ;;  %250 = vst [vmem:[%s2387_s11 + $0x64] sm:$0xf] %v249_v25  ;;  %v253_v27 = vld [vmem:[%s2382_s10 + $0x158] sm:$0xf] }
  0x27   : > { %252 = vst [vmem:[%s2387_s11 + $0x68] sm:$0xf] %v251_v26  ;;  %v255_v28 = vld [vmem:[%s2382_s10 + $0x160] sm:$0xf]  ;;  %v257_v29 = vld [vmem:[%s2382_s10 + $0x168] sm:$0xf] }
  0x28   : > { %254 = vst [vmem:[%s2387_s11 + $0x6c] sm:$0xf] %v253_v27  ;;  %256 = vst [vmem:[%s2387_s11 + $0x70] sm:$0xf] %v255_v28  ;;  %v259_v30 = vld [vmem:[%s2382_s10 + $0x170] sm:$0xf] }
  0x29   : > { %258 = vst [vmem:[%s2387_s11 + $0x74] sm:$0xf] %v257_v29  ;;  %v261_v31 = vld [vmem:[%s2382_s10 + $0x178] sm:$0xf]  ;;  %v263_v32 = vld [vmem:[%s2382_s10 + $0x200] sm:$0xf] }
  0x2a   : > { %260 = vst [vmem:[%s2387_s11 + $0x78] sm:$0xf] %v259_v30  ;;  %262 = vst [vmem:[%s2387_s11 + $0x7c] sm:$0xf] %v261_v31  ;;  %v265_v33 = vld [vmem:[%s2382_s10 + $0x208] sm:$0xf] }
  0x2b   : > { %264 = vst [vmem:[%s2387_s11 + $0x80] sm:$0xf] %v263_v32  ;;  %v267_v34 = vld [vmem:[%s2382_s10 + $0x210] sm:$0xf]  ;;  %v269_v35 = vld [vmem:[%s2382_s10 + $0x218] sm:$0xf] }
  0x2c   : > { %266 = vst [vmem:[%s2387_s11 + $0x84] sm:$0xf] %v265_v33  ;;  %268 = vst [vmem:[%s2387_s11 + $0x88] sm:$0xf] %v267_v34  ;;  %v271_v36 = vld [vmem:[%s2382_s10 + $0x220] sm:$0xf] }
  0x2d   : > { %270 = vst [vmem:[%s2387_s11 + $0x8c] sm:$0xf] %v269_v35  ;;  %v273_v37 = vld [vmem:[%s2382_s10 + $0x228] sm:$0xf]  ;;  %v275_v38 = vld [vmem:[%s2382_s10 + $0x230] sm:$0xf] }
  0x2e   : > { %272 = vst [vmem:[%s2387_s11 + $0x90] sm:$0xf] %v271_v36  ;;  %274 = vst [vmem:[%s2387_s11 + $0x94] sm:$0xf] %v273_v37  ;;  %v277_v39 = vld [vmem:[%s2382_s10 + $0x238] sm:$0xf] }
  0x2f   : > { %276 = vst [vmem:[%s2387_s11 + $0x98] sm:$0xf] %v275_v38  ;;  %v279_v40 = vld [vmem:[%s2382_s10 + $0x240] sm:$0xf]  ;;  %v281_v41 = vld [vmem:[%s2382_s10 + $0x248] sm:$0xf] }
  0x30   : > { %278 = vst [vmem:[%s2387_s11 + $0x9c] sm:$0xf] %v277_v39  ;;  %280 = vst [vmem:[%s2387_s11 + $0xa0] sm:$0xf] %v279_v40  ;;  %v283_v42 = vld [vmem:[%s2382_s10 + $0x250] sm:$0xf] }
  0x31   : > { %282 = vst [vmem:[%s2387_s11 + $0xa4] sm:$0xf] %v281_v41  ;;  %v285_v43 = vld [vmem:[%s2382_s10 + $0x258] sm:$0xf]  ;;  %v287_v44 = vld [vmem:[%s2382_s10 + $0x260] sm:$0xf] }
  0x32   : > { %284 = vst [vmem:[%s2387_s11 + $0xa8] sm:$0xf] %v283_v42  ;;  %286 = vst [vmem:[%s2387_s11 + $0xac] sm:$0xf] %v285_v43  ;;  %v289_v45 = vld [vmem:[%s2382_s10 + $0x268] sm:$0xf] }
  0x33   : > { %288 = vst [vmem:[%s2387_s11 + $0xb0] sm:$0xf] %v287_v44  ;;  %v291_v46 = vld [vmem:[%s2382_s10 + $0x270] sm:$0xf]  ;;  %v293_v47 = vld [vmem:[%s2382_s10 + $0x278] sm:$0xf] }
  0x34   : > { %290 = vst [vmem:[%s2387_s11 + $0xb4] sm:$0xf] %v289_v45  ;;  %292 = vst [vmem:[%s2387_s11 + $0xb8] sm:$0xf] %v291_v46 }
  0x35   : > { %294 = vst [vmem:[%s2387_s11 + $0xbc] sm:$0xf] %v293_v47 }
  0x36 PF: > { %p1787_p7 = scmp.ge.s32.totalorder %s2294_s21, 1  ;;  %p431_p8 = scmp.lt.s32.totalorder %s2294_s21, 5 }
  0x38   : > { %p432_p9 = pnand %p1787_p7, %p431_p8 }
  0x39   : > { %s438_s12 = sand.u32 (!%p432_p9), 1, %s2270_s15   ;;  %s1788_s13 = sshll.u32 (!%p432_p9), %s2278_s17, 4 }
  0x3a   : > { %435 = sbr.rel (%p432_p9) target bundleno = 797 (0x31d), region = 73  ;;  %p475_p10 = scmp.lt.s32.totalorder (!%p432_p9), %s1788_s13, 31 }
  0x3b   : > { %s2150_s14 = smul.u32 (!%p432_p9), 192, %s438_s12  ;;  %s1790_s24 = sshll.u32 (!%p432_p9), %s2282_s18, 4 }
  0x3c   : > { %p481_p11 = scmp.lt.s32.totalorder (!%p432_p9), %s1790_s24, 31  ;;  %p1794_p12 = scmp.ne.s32.totalorder (!%p432_p9), %s2278_s17, 0 }
  0x3d   : > { %s2502_s10 = scalar_lea.vmem (!%p432_p9), [#allocation3], %s2150_s14 }
  0x3f   : > { %s2823_s13 = smov (!%p475_p10, %s1788_s13), 31  ;;  %s2825_s24 = smov (!%p481_p11, %s1790_s24), 31 }
  0x40   : > { %s1789_s25 = sshll.u32 %s2823_s13, 2  ;;  %s1791_s30 = sshll.u32 %s2825_s24, 3 }
  0x41   : > { %s2490_s29 = scalar_lea.vmem %s2806_s1, %s1789_s25  ;;  %s2495_s7 = scalar_lea.vmem %s2808_s3, %s1791_s30 }
  0x42   : > { %s1793_s15 = sshll.u32 %s2825_s24, 2  ;;  %496 = sbr.rel (%p1794_p12) target bundleno = 80 (0x50), region = 81 }
  0x43   : > { %s2500_s18 = scalar_lea.vmem %s2809_s4, %s1793_s15 }
  0x47   : > { %vm497_vm0 = vcmask 261120   ;;  %v2296_v48 = vmov 0.0  }
  0x48   : > { %498 = vst.msk [vmem:[#allocation2] sm:$0xff] %vm497_vm0, %v2296_v48  ;;  %499 = vst.msk [vmem:[#allocation2 + $0x8] sm:$0xff] %vm497_vm0, %v2296_v48 }
  0x49   : > { %500 = vst.msk [vmem:[#allocation2 + $0x10] sm:$0xff] %vm497_vm0, %v2296_v48  ;;  %501 = vst.msk [vmem:[#allocation2 + $0x18] sm:$0xff] %vm497_vm0, %v2296_v48 }
  0x4a   : > { %502 = vst.msk [vmem:[#allocation2 + $0x20] sm:$0xff] %vm497_vm0, %v2296_v48  ;;  %503 = vst.msk [vmem:[#allocation2 + $0x28] sm:$0xff] %vm497_vm0, %v2296_v48 }
  0x4b   : > { %504 = vst.msk [vmem:[#allocation2 + $0x30] sm:$0xff] %vm497_vm0, %v2296_v48  ;;  %505 = vst.msk [vmem:[#allocation2 + $0x38] sm:$0xff] %vm497_vm0, %v2296_v48 }
  0x4c   : > { %506 = vst.msk [vmem:[#allocation2 + $0x40] sm:$0xff] %vm497_vm0, %v2296_v48  ;;  %507 = vst.msk [vmem:[#allocation2 + $0x48] sm:$0xff] %vm497_vm0, %v2296_v48 }
  0x4d   : > { %508 = vst.msk [vmem:[#allocation2 + $0x50] sm:$0xff] %vm497_vm0, %v2296_v48  ;;  %509 = vst.msk [vmem:[#allocation2 + $0x58] sm:$0xff] %vm497_vm0, %v2296_v48 }
  0x4e   : > { %510 = vst.msk [vmem:[#allocation2 + $0x60] sm:$0xff] %vm497_vm0, %v2296_v48  ;;  %511 = vst.msk [vmem:[#allocation2 + $0x68] sm:$0xff] %vm497_vm0, %v2296_v48 }
  0x4f   : > { %512 = vst.msk [vmem:[#allocation2 + $0x70] sm:$0xff] %vm497_vm0, %v2296_v48  ;;  %513 = vst.msk [vmem:[#allocation2 + $0x78] sm:$0xff] %vm497_vm0, %v2296_v48 }
  0x50 PF: > { %v2522_v49 = vld [vmem:[%s2490_s29 + $0x38] sm:$0xff]   ;;  %v2525_v50 = vld [vmem:[%s2490_s29 + $0x30] sm:$0xff]   ;;  %v2534_v51 = vld [vmem:[%s2490_s29 + $0x28] sm:$0xff]   ;;  %vm945_vm1 = vcmask 1043456   ;;  %vm920_vm2 = vcmask 64512   ;;  %vm1514_vm3 = vcmask 261120  }
  0x51   : > { %1996 = vmatprep.subr.bf16.mxu0 %v2522_v49  ;;  %2028 = vmatprep.subr.bf16.mxu1 %v2522_v49  ;;  %v2539_v52 = vld [vmem:[%s2490_s29 + $0x20] sm:$0xff]   ;;  %v2550_v55 = vld [vmem:[%s2490_s29 + $0x18] sm:$0xff]   ;;  %v2557_v56 = vld [vmem:[%s2490_s29 + $0x10] sm:$0xff]   ;;  %p1885_p13 = scmp.ne.s32.totalorder %s2278_s17, 1 }
  0x52   : > { %1997 = vmatpush3.bf16.msra.mxu0 %v2522_v49  ;;  %2029 = vmatpush3.bf16.msra.mxu1 %v2522_v49  ;;  %v2216_v53 = vld [vmem:[%s2502_s10] sm:$0xff]   ;;  %v2564_v57 = vld [vmem:[%s2490_s29 + $0x8] sm:$0xff]   ;;  %v2220_v62 = vld [vmem:[%s2502_s10 + $0x10] sm:$0xff]  }
  0x53   : > { %1998 = vmatprep.subr.bf16.mxu0 %v2525_v50  ;;  %2030 = vmatprep.subr.bf16.mxu1 %v2525_v50  ;;  %v2217_v54 = vld [vmem:[%s2502_s10 + $0x40] sm:$0xff]   ;;  %v2218_v60 = vld [vmem:[%s2502_s10 + $0x8] sm:$0xff]   ;;  %v2221_v63 = vld [vmem:[%s2502_s10 + $0x50] sm:$0xff]  }
  0x54   : > { %2012 = vmatprep.mubr.bf16.mxu0 %v2216_v53  ;;  %2044 = vmatprep.mubr.bf16.mxu1 %v2217_v54  ;;  %v2571_v58 = vld [vmem:[%s2490_s29] sm:$0xff]   ;;  %v2219_v61 = vld [vmem:[%s2502_s10 + $0x48] sm:$0xff]   ;;  %v2222_v1 = vld [vmem:[%s2502_s10 + $0x18] sm:$0xff]  }
  0x55   : > { %v1835_v59 = vld [vmem:[%s2807_s2 + $0x4] sm:$0xf]  ;;  %v2223_v2 = vld [vmem:[%s2502_s10 + $0x58] sm:$0xff]   ;;  %v2226_v5 = vld [vmem:[%s2502_s10 + $0x28] sm:$0xff]  }
  0x56   : > { %1999 = vmatpush3.bf16.msra.mxu0 %v2525_v50  ;;  %2031 = vmatpush3.bf16.msra.mxu1 %v2525_v50  ;;  %v947_v0 = vsel %vm945_vm1, %v1835_v59, 0  ;;  %v2224_v3 = vld [vmem:[%s2502_s10 + $0x20] sm:$0xff]   ;;  %v2227_v6 = vld [vmem:[%s2502_s10 + $0x68] sm:$0xff]   ;;  %v2228_v7 = vld [vmem:[%s2502_s10 + $0x30] sm:$0xff]  }
  0x57   : > { %2000 = vmatprep.subr.bf16.mxu0 %v2534_v51  ;;  %2032 = vmatprep.subr.bf16.mxu1 %v2534_v51  ;;  %v2225_v4 = vld [vmem:[%s2502_s10 + $0x60] sm:$0xff]   ;;  %v2229_v8 = vld [vmem:[%s2502_s10 + $0x70] sm:$0xff]   ;;  %v2230_v9 = vld [vmem:[%s2502_s10 + $0x38] sm:$0xff]  }
  0x58   : > { %v2231_v10 = vld [vmem:[%s2502_s10 + $0x78] sm:$0xff]   ;;  %v747_v11 = vld [vmem:[%s2807_s2] sm:$0xf] }
  0x59   : > { %v1071_v12 = vsel %vm945_vm1, %v747_v11, 0 }
  0x5a   : > { %2001 = vmatpush3.bf16.msra.mxu0 %v2534_v51  ;;  %2033 = vmatpush3.bf16.msra.mxu1 %v2534_v51 }
  0x5b   : > { %2002 = vmatprep.subr.bf16.mxu0 %v2539_v52  ;;  %2034 = vmatprep.subr.bf16.mxu1 %v2539_v52 }
  0x5e   : > { %2003 = vmatpush3.bf16.msra.mxu0 %v2539_v52  ;;  %2035 = vmatpush3.bf16.msra.mxu1 %v2539_v52 }
  0x5f   : > { %2004 = vmatprep.subr.bf16.mxu0 %v2550_v55  ;;  %2036 = vmatprep.subr.bf16.mxu1 %v2550_v55 }
  0x62   : > { %2005 = vmatpush3.bf16.msra.mxu0 %v2550_v55  ;;  %2037 = vmatpush3.bf16.msra.mxu1 %v2550_v55 }
  0x63   : > { %2006 = vmatprep.subr.bf16.mxu0 %v2557_v56  ;;  %2038 = vmatprep.subr.bf16.mxu1 %v2557_v56 }
  0x66   : > { %2007 = vmatpush3.bf16.msra.mxu0 %v2557_v56  ;;  %2039 = vmatpush3.bf16.msra.mxu1 %v2557_v56 }
  0x67   : > { %2008 = vmatprep.subr.bf16.mxu0 %v2564_v57  ;;  %2040 = vmatprep.subr.bf16.mxu1 %v2564_v57 }
  0x6a   : > { %2009 = vmatpush3.bf16.msra.mxu0 %v2564_v57  ;;  %2041 = vmatpush3.bf16.msra.mxu1 %v2564_v57 }
  0x6b   : > { %2010 = vmatprep.subr.bf16.mxu0 %v2571_v58  ;;  %2042 = vmatprep.subr.bf16.mxu1 %v2571_v58 }
  0x6e   : > { %2011 = vmatpush3.bf16.msra.mxu0 %v2571_v58  ;;  %2043 = vmatpush3.bf16.msra.mxu1 %v2571_v58 }
  0x6f   : > { %2146 = vmatprep.subr.msk.bf16.mxu0 %vm945_vm1, %v1835_v59  ;;  %2147 = vmatprep.subr.msk.bf16.mxu1 %vm945_vm1, %v747_v11 }
  0x71   : > { %2013 = vmatmul.mubr.bf16.vlgmr.msra.gmra.mxu0 %v2218_v60  ;;  %2045 = vmatmul.mubr.bf16.vlgmr.msra.gmra.mxu1 %v2219_v61 }
  0x72   : > { %2016 = vmatprep.mubr.bf16.mxu0 %v2220_v62  ;;  %2048 = vmatprep.mubr.bf16.mxu1 %v2221_v63 }
  0x73   : > { %2061 = vmatpush3.bf16.msra.mxu0 %v947_v0  ;;  %2079 = vmatpush3.bf16.msra.mxu1 %v1071_v12  ;;  %v2232_v0 = vld [vmem:[%s2502_s10 + $0x80] sm:$0xff]  }
  0x74   : > { %2096 = vmatprep.subr.bf16.mxu0 %v2522_v49 }
  0x79   : > { %2017 = vmatmul.mubr.bf16.gmra.mxu0 %v2222_v1  ;;  %2049 = vmatmul.mubr.bf16.gmra.mxu1 %v2223_v2  ;;  %v2235_v2 = vld [vmem:[%s2502_s10 + $0x98] sm:$0xff]  }
  0x7a   : > { %2020 = vmatprep.mubr.bf16.mxu0 %v2224_v3  ;;  %2052 = vmatprep.mubr.bf16.mxu1 %v2225_v4  ;;  %v2236_v3 = vld [vmem:[%s2502_s10 + $0xa0] sm:$0xff]   ;;  %v2237_v4 = vld [vmem:[%s2502_s10 + $0xa8] sm:$0xff]  }
  0x81   : > { %2021 = vmatmul.mubr.bf16.gmra.mxu0 %v2226_v5  ;;  %2053 = vmatmul.mubr.bf16.gmra.mxu1 %v2227_v6  ;;  %v2238_v5 = vld [vmem:[%s2502_s10 + $0xb0] sm:$0xff]   ;;  %v2239_v6 = vld [vmem:[%s2502_s10 + $0xb8] sm:$0xff]  }
  0x82   : > { %2024 = vmatprep.mubr.bf16.mxu0 %v2228_v7  ;;  %2056 = vmatprep.mubr.bf16.mxu1 %v2229_v8 }
  0x89   : > { %2025 = vmatmul.mubr.bf16.gmra.mxu0 %v2230_v9  ;;  %2057 = vmatmul.mubr.bf16.gmra.mxu1 %v2231_v10 }
 0x131   : > { %v2014_v13 = vpop.f32.mrf.mxu0  ;;  %v2046_v14 = vpop.f32.mrf.mxu1 }
 0x133   : > { %v676_v15 = vpop.f32.mrf.mxu0  ;;  %v847_v16 = vpop.f32.mrf.mxu1 }
 0x135   : > { %v2015_v17 = vpop.f32.mrf.mxu0  ;;  %v2047_v18 = vpop.f32.mrf.mxu1 }
 0x136   : > { %v740_v19 = vpack.c.bf16 %v2015_v17, %v2014_v13  ;;  %v911_v24 = vpack.c.bf16 %v2047_v18, %v2046_v14 }
 0x137   : > { %v679_v20 = vpop.f32.mrf.mxu0  ;;  %v850_v21 = vpop.f32.mrf.mxu1 }
 0x138   : > { %v739_v22 = vpack.c.bf16 %v679_v20, %v676_v15  ;;  %v910_v23 = vpack.c.bf16 %v850_v21, %v847_v16 }
 0x139   : > { %v2018_v25 = vpop.f32.mrf.mxu0  ;;  %v2050_v26 = vpop.f32.mrf.mxu1 }
 0x13a   : > { %2062 = vmatprep.mubr.msk.bf16.mxu0 %vm920_vm2, %v910_v23  ;;  %2080 = vmatprep.mubr.msk.bf16.mxu1 %vm920_vm2, %v739_v22 }
 0x13b   : > { %v692_v27 = vpop.f32.mrf.mxu0  ;;  %v863_v28 = vpop.f32.mrf.mxu1  ;;  %2063 = vmatmul.mubr.msk.bf16.vlgmr.msra.gmra.mxu0 %vm920_vm2, %v911_v24  ;;  %2081 = vmatmul.mubr.msk.bf16.vlgmr.msra.gmra.mxu1 %vm920_vm2, %v740_v19 }
 0x13c   : > { %2097 = vmatpush3.bf16.msra.mxu0 %v2522_v49 }
 0x13d   : > { %v2019_v29 = vpop.f32.mrf.mxu0  ;;  %v2051_v30 = vpop.f32.mrf.mxu1  ;;  %2098 = vmatprep.subr.bf16.mxu0 %v2525_v50 }
 0x13e   : > { %v742_v31 = vpack.c.bf16 %v2019_v29, %v2018_v25  ;;  %v913_v36 = vpack.c.bf16 %v2051_v30, %v2050_v26 }
 0x13f   : > { %v695_v32 = vpop.f32.mrf.mxu0  ;;  %v866_v33 = vpop.f32.mrf.mxu1 }
 0x140   : > { %v741_v34 = vpack.c.bf16 %v695_v32, %v692_v27  ;;  %v912_v35 = vpack.c.bf16 %v866_v33, %v863_v28  ;;  %2099 = vmatpush3.bf16.msra.mxu0 %v2525_v50 }
 0x141   : > { %v2022_v37 = vpop.f32.mrf.mxu0  ;;  %v2054_v38 = vpop.f32.mrf.mxu1  ;;  %2100 = vmatprep.subr.bf16.mxu0 %v2534_v51 }
 0x142   : > { %2066 = vmatprep.mubr.msk.bf16.mxu0 %vm920_vm2, %v912_v35  ;;  %2084 = vmatprep.mubr.msk.bf16.mxu1 %vm920_vm2, %v741_v34 }
 0x143   : > { %v708_v39 = vpop.f32.mrf.mxu0  ;;  %v879_v40 = vpop.f32.mrf.mxu1  ;;  %2067 = vmatmul.mubr.msk.bf16.gmra.mxu0 %vm920_vm2, %v913_v36  ;;  %2085 = vmatmul.mubr.msk.bf16.gmra.mxu1 %vm920_vm2, %v742_v31 }
 0x144   : > { %2101 = vmatpush3.bf16.msra.mxu0 %v2534_v51 }
 0x145   : > { %v2023_v41 = vpop.f32.mrf.mxu0  ;;  %v2055_v42 = vpop.f32.mrf.mxu1  ;;  %2102 = vmatprep.subr.bf16.mxu0 %v2539_v52 }
 0x146   : > { %v744_v43 = vpack.c.bf16 %v2023_v41, %v2022_v37  ;;  %v915_v48 = vpack.c.bf16 %v2055_v42, %v2054_v38 }
 0x147   : > { %v711_v44 = vpop.f32.mrf.mxu0  ;;  %v882_v45 = vpop.f32.mrf.mxu1 }
 0x148   : > { %v743_v46 = vpack.c.bf16 %v711_v44, %v708_v39  ;;  %v914_v47 = vpack.c.bf16 %v882_v45, %v879_v40  ;;  %2103 = vmatpush3.bf16.msra.mxu0 %v2539_v52 }
 0x149   : > { %v2026_v49 = vpop.f32.mrf.mxu0  ;;  %v2058_v50 = vpop.f32.mrf.mxu1  ;;  %2104 = vmatprep.subr.bf16.mxu0 %v2550_v55 }
 0x14a   : > { %2070 = vmatprep.mubr.msk.bf16.mxu0 %vm920_vm2, %v914_v47  ;;  %2088 = vmatprep.mubr.msk.bf16.mxu1 %vm920_vm2, %v743_v46 }
 0x14b   : > { %v724_v51 = vpop.f32.mrf.mxu0  ;;  %v895_v53 = vpop.f32.mrf.mxu1  ;;  %2071 = vmatmul.mubr.msk.bf16.gmra.mxu0 %vm920_vm2, %v915_v48  ;;  %2089 = vmatmul.mubr.msk.bf16.gmra.mxu1 %vm920_vm2, %v744_v43 }
 0x14c   : > { %2105 = vmatpush3.bf16.msra.mxu0 %v2550_v55  ;;  %v2233_v55 = vld [vmem:[%s2502_s10 + $0x88] sm:$0xff]  }
 0x14d   : > { %v2027_v54 = vpop.f32.mrf.mxu0  ;;  %v2059_v52 = vpop.f32.mrf.mxu1  ;;  %2106 = vmatprep.subr.bf16.mxu0 %v2557_v56 }
 0x14e   : > { %v746_v59 = vpack.c.bf16 %v2027_v54, %v2026_v49  ;;  %v917_v1 = vpack.c.bf16 %v2059_v52, %v2058_v50 }
 0x14f   : > { %v727_v60 = vpop.f32.mrf.mxu0  ;;  %v898_v61 = vpop.f32.mrf.mxu1 }
 0x150   : > { %v745_v62 = vpack.c.bf16 %v727_v60, %v724_v51  ;;  %v916_v63 = vpack.c.bf16 %v898_v61, %v895_v53  ;;  %2107 = vmatpush3.bf16.msra.mxu0 %v2557_v56  ;;  %v2234_v56 = vld [vmem:[%s2502_s10 + $0x90] sm:$0xff]  }
 0x151   : > { %2108 = vmatprep.subr.bf16.mxu0 %v2564_v57 }
 0x152   : > { %2074 = vmatprep.mubr.msk.bf16.mxu0 %vm920_vm2, %v916_v63  ;;  %2092 = vmatprep.mubr.msk.bf16.mxu1 %vm920_vm2, %v745_v62 }
 0x153   : > { %2075 = vmatmul.mubr.msk.bf16.gmra.mxu0 %vm920_vm2, %v917_v1  ;;  %2093 = vmatmul.mubr.msk.bf16.gmra.mxu1 %vm920_vm2, %v746_v59 }
 0x154   : > { %2109 = vmatpush3.bf16.msra.mxu0 %v2564_v57  ;;  %2112 = vmatprep.mubr.bf16.mxu0 %v2232_v0  ;;  %v1876_v57 = vld [vmem:[%s2807_s2 + $0x8] sm:$0xf] }
 0x155   : > { %2110 = vmatprep.subr.bf16.mxu0 %v2571_v58  ;;  %2148 = vmatprep.subr.msk.bf16.mxu1 %vm945_vm1, %v1876_v57 }
 0x158   : > { %2111 = vmatpush3.bf16.msra.mxu0 %v2571_v58  ;;  %v1367_v58 = vsel %vm945_vm1, %v1876_v57, 0  ;;  %v1482_v57 = vld [vmem:[#allocation2] sm:$0xff] }
 0x159   : > { %2129 = vmatpush3.bf16.msra.mxu1 %v1367_v58 }
 0x15b   : > { %2113 = vmatmul.mubr.bf16.vlgmr.msra.gmra.mxu0 %v2233_v55 }
 0x15c   : > { %2116 = vmatprep.mubr.bf16.mxu0 %v2234_v56 }
 0x163   : > { %2117 = vmatmul.mubr.bf16.gmra.mxu0 %v2235_v2 }
 0x164   : > { %2120 = vmatprep.mubr.bf16.mxu0 %v2236_v3  ;;  %v1484_v3 = vld [vmem:[#allocation2 + $0x10] sm:$0xff] }
 0x16b   : > { %2121 = vmatmul.mubr.bf16.gmra.mxu0 %v2237_v4 }
 0x16c   : > { %2124 = vmatprep.mubr.bf16.mxu0 %v2238_v5 }
 0x173   : > { %2125 = vmatmul.mubr.bf16.gmra.mxu0 %v2239_v6 }
 0x1fb   : > { %v2648_v7 = vpop.f32.mrf.mxu0  ;;  %v2082_v47 = vpop.f32.mrf.mxu1 }
 0x1fc   : > { %v1116_v56 = vadd.f32 %v2082_v47, %v2648_v7 }
 0x1fd   : > { %v2650_v8 = vpop.f32.mrf.mxu0  ;;  %v1107_v48 = vpop.f32.mrf.mxu1 }
 0x1fe   : > { %v1108_v4 = vadd.f32 %v1107_v48, %v2650_v8 }
 0x1ff   : > { %v2652_v9 = vpop.f32.mrf.mxu0  ;;  %v2083_v49 = vpop.f32.mrf.mxu1 }
 0x200   : > { %v1119_v58 = vadd.f32 %v2083_v49, %v2652_v9  ;;  %v1488_v9 = vld [vmem:[#allocation2 + $0x30] sm:$0xff] }
 0x201   : > { %v2654_v10 = vpop.f32.mrf.mxu0  ;;  %v1110_v50 = vpop.f32.mrf.mxu1  ;;  %v1492_v49 = vld [vmem:[#allocation2 + $0x50] sm:$0xff] }
 0x203   : > { %v2656_v11 = vpop.f32.mrf.mxu0  ;;  %v2086_v51 = vpop.f32.mrf.mxu1 }
 0x204   : > { %v1132_v8 = vadd.f32 %v2086_v51, %v2656_v11 }
 0x205   : > { %v2658_v12 = vpop.f32.mrf.mxu0  ;;  %v1123_v53 = vpop.f32.mrf.mxu1 }
 0x207   : > { %v2660_v13 = vpop.f32.mrf.mxu0  ;;  %v2087_v54 = vpop.f32.mrf.mxu1 }
 0x209   : > { %v2662_v14 = vpop.f32.mrf.mxu0  ;;  %v1126_v52 = vpop.f32.mrf.mxu1 }
 0x20b   : > { %v2664_v15 = vpop.f32.mrf.mxu0  ;;  %v2090_v59 = vpop.f32.mrf.mxu1 }
 0x20d   : > { %v2666_v16 = vpop.f32.mrf.mxu0  ;;  %v1139_v60 = vpop.f32.mrf.mxu1 }
 0x20f   : > { %v2668_v17 = vpop.f32.mrf.mxu0  ;;  %v2091_v61 = vpop.f32.mrf.mxu1 }
 0x211   : > { %v2670_v18 = vpop.f32.mrf.mxu0  ;;  %v2688_v62 = vpop.f32.mrf.mxu1 }
 0x213   : > { %v2672_v19 = vpop.f32.mrf.mxu0  ;;  %v2690_v63 = vpop.f32.mrf.mxu1 }
 0x215   : > { %v2674_v20 = vpop.f32.mrf.mxu0  ;;  %v2692_v0 = vpop.f32.mrf.mxu1 }
 0x217   : > { %v2676_v21 = vpop.f32.mrf.mxu0  ;;  %v2694_v1 = vpop.f32.mrf.mxu1 }
 0x219   : > { %v2678_v22 = vpop.f32.mrf.mxu0  ;;  %v2696_v55 = vpop.f32.mrf.mxu1 }
 0x21b   : > { %v2114_v23 = vpop.f32.mrf.mxu0 }
 0x21d   : > { %v1269_v24 = vpop.f32.mrf.mxu0 }
 0x21f   : > { %v2115_v25 = vpop.f32.mrf.mxu0 }
 0x220   : > { %v1333_v28 = vpack.c.bf16 %v2115_v25, %v2114_v23 }
 0x221   : > { %v1272_v26 = vpop.f32.mrf.mxu0 }
 0x222   : > { %v1332_v27 = vpack.c.bf16 %v1272_v26, %v1269_v24  ;;  %v1485_v26 = vld [vmem:[#allocation2 + $0x18] sm:$0xff] }
 0x223   : > { %v2118_v29 = vpop.f32.mrf.mxu0 }
 0x224   : > { %2130 = vmatprep.mubr.msk.bf16.mxu1 %vm920_vm2, %v1332_v27  ;;  %v1111_v27 = vadd.f32 %v1110_v50, %v2654_v10  ;;  %v1140_v50 = vadd.f32 %v1139_v60, %v2666_v16 }
 0x225   : > { %v1285_v30 = vpop.f32.mrf.mxu0  ;;  %2131 = vmatmul.mubr.msk.bf16.vlgmr.msra.gmra.mxu1 %vm920_vm2, %v1333_v28 }
 0x227   : > { %v2119_v31 = vpop.f32.mrf.mxu0 }
 0x228   : > { %v1335_v34 = vpack.c.bf16 %v2119_v31, %v2118_v29 }
 0x229   : > { %v1288_v32 = vpop.f32.mrf.mxu0 }
 0x22a   : > { %v1334_v33 = vpack.c.bf16 %v1288_v32, %v1285_v30  ;;  %v1483_v30 = vld [vmem:[#allocation2 + $0x8] sm:$0xff] }
 0x22b   : > { %v2122_v35 = vpop.f32.mrf.mxu0 }
 0x22c   : > { %2134 = vmatprep.mubr.msk.bf16.mxu1 %vm920_vm2, %v1334_v33 }
 0x22d   : > { %v1301_v36 = vpop.f32.mrf.mxu0  ;;  %2135 = vmatmul.mubr.msk.bf16.gmra.mxu1 %vm920_vm2, %v1335_v34  ;;  %v1124_v34 = vadd.f32 %v1123_v53, %v2658_v12 }
 0x22f   : > { %v2123_v37 = vpop.f32.mrf.mxu0 }
 0x230   : > { %v1337_v40 = vpack.c.bf16 %v2123_v37, %v2122_v35  ;;  %v1486_v37 = vld [vmem:[#allocation2 + $0x20] sm:$0xff] }
 0x231   : > { %v1304_v38 = vpop.f32.mrf.mxu0 }
 0x232   : > { %v1336_v39 = vpack.c.bf16 %v1304_v38, %v1301_v36  ;;  %v1135_v38 = vadd.f32 %v2087_v54, %v2660_v13  ;;  %v1490_v54 = vld [vmem:[#allocation2 + $0x40] sm:$0xff] }
 0x233   : > { %v2126_v41 = vpop.f32.mrf.mxu0 }
 0x234   : > { %2138 = vmatprep.mubr.msk.bf16.mxu1 %vm920_vm2, %v1336_v39 }
 0x235   : > { %v1317_v42 = vpop.f32.mrf.mxu0  ;;  %2139 = vmatmul.mubr.msk.bf16.gmra.mxu1 %vm920_vm2, %v1337_v40 }
 0x237   : > { %v2127_v43 = vpop.f32.mrf.mxu0 }
 0x238   : > { %v1339_v46 = vpack.c.bf16 %v2127_v43, %v2126_v41  ;;  %v1489_v41 = vld [vmem:[#allocation2 + $0x38] sm:$0xff] }
 0x239   : > { %v1320_v44 = vpop.f32.mrf.mxu0 }
 0x23a   : > { %v1338_v45 = vpack.c.bf16 %v1320_v44, %v1317_v42  ;;  %v1127_v42 = vadd.f32 %v1126_v52, %v2662_v14  ;;  %v1151_v52 = vadd.f32 %v2091_v61, %v2668_v17 }
 0x23c   : > { %2142 = vmatprep.mubr.msk.bf16.mxu1 %vm920_vm2, %v1338_v45  ;;  %v1487_v45 = vld [vmem:[#allocation2 + $0x28] sm:$0xff] }
 0x23d   : > { %2143 = vmatmul.mubr.msk.bf16.gmra.mxu1 %vm920_vm2, %v1339_v46  ;;  %v1148_v46 = vadd.f32 %v2090_v59, %v2664_v15 }
 0x2e5   : > { %v2132_v2 = vpop.f32.mrf.mxu1 }
 0x2e6   : > { %v1468_v5 = vadd.f32 %v2132_v2, %v1116_v56  ;;  %v1493_v2 = vld [vmem:[#allocation2 + $0x58] sm:$0xff] }
 0x2e7   : > { %v1403_v6 = vpop.f32.mrf.mxu1 }
 0x2e8   : > { %v1500_v23 = vadd.f32 %v1484_v3, %v1468_v5  ;;  %v1466_v24 = vadd.f32 %v1403_v6, %v1108_v4  ;;  %v1143_v3 = vadd.f32 %v2688_v62, %v2670_v18  ;;  %v1491_v5 = vld [vmem:[#allocation2 + $0x48] sm:$0xff]  ;;  %v1164_v6 = vadd.f32 %v2690_v63, %v2672_v19 }
 0x2e9   : > { %v2133_v25 = vpop.f32.mrf.mxu1 }
 0x2ea   : > { %1517 = vst.msk [vmem:[#allocation2 + $0x10] sm:$0xff] %vm1514_vm3, %v1500_v23  ;;  %v1498_v28 = vadd.f32 %v1482_v57, %v1466_v24  ;;  %v1469_v7 = vadd.f32 %v2133_v25, %v1119_v58  ;;  %v1496_v58 = vld [vmem:[#allocation2 + $0x70] sm:$0xff]  ;;  %v1156_v23 = vadd.f32 %v2692_v0, %v2674_v20  ;;  %v1494_v25 = vld [vmem:[#allocation2 + $0x60] sm:$0xff] }
 0x2eb   : > { %v1406_v29 = vpop.f32.mrf.mxu1 }
 0x2ec   : > { %1515 = vst.msk [vmem:[#allocation2] sm:$0xff] %vm1514_vm3, %v1498_v28  ;;  %v1501_v31 = vadd.f32 %v1485_v26, %v1469_v7  ;;  %v1467_v32 = vadd.f32 %v1406_v29, %v1111_v27  ;;  %v1167_v26 = vadd.f32 %v2694_v1, %v2676_v21  ;;  %v1497_v28 = vld [vmem:[#allocation2 + $0x78] sm:$0xff]  ;;  %v1159_v7 = vadd.f32 %v2696_v55, %v2678_v22 }
 0x2ed   : > { %v2136_v33 = vpop.f32.mrf.mxu1 }
 0x2ee   : > { %1518 = vst.msk [vmem:[#allocation2 + $0x18] sm:$0xff] %vm1514_vm3, %v1501_v31  ;;  %v1499_v35 = vadd.f32 %v1483_v30, %v1467_v32  ;;  %v1472_v10 = vadd.f32 %v2136_v33, %v1132_v8  ;;  %v1495_v30 = vld [vmem:[#allocation2 + $0x68] sm:$0xff] }
 0x2ef   : > { %v1419_v36 = vpop.f32.mrf.mxu1 }
 0x2f0   : > { %1516 = vst.msk [vmem:[#allocation2 + $0x8] sm:$0xff] %vm1514_vm3, %v1499_v35  ;;  %v1504_v39 = vadd.f32 %v1488_v9, %v1472_v10  ;;  %v1470_v11 = vadd.f32 %v1419_v36, %v1124_v34 }
 0x2f1   : > { %v2137_v40 = vpop.f32.mrf.mxu1 }
 0x2f2   : > { %1521 = vst.msk [vmem:[#allocation2 + $0x30] sm:$0xff] %vm1514_vm3, %v1504_v39  ;;  %v1502_v43 = vadd.f32 %v1486_v37, %v1470_v11  ;;  %v1473_v12 = vadd.f32 %v2137_v40, %v1135_v38 }
 0x2f3   : > { %v1422_v44 = vpop.f32.mrf.mxu1 }
 0x2f4   : > { %1519 = vst.msk [vmem:[#allocation2 + $0x20] sm:$0xff] %vm1514_vm3, %v1502_v43  ;;  %v1505_v47 = vadd.f32 %v1489_v41, %v1473_v12  ;;  %v1471_v13 = vadd.f32 %v1422_v44, %v1127_v42 }
 0x2f5   : > { %v2140_v48 = vpop.f32.mrf.mxu1 }
 0x2f6   : > { %1522 = vst.msk [vmem:[#allocation2 + $0x38] sm:$0xff] %vm1514_vm3, %v1505_v47  ;;  %v1503_v51 = vadd.f32 %v1487_v45, %v1471_v13  ;;  %v1476_v14 = vadd.f32 %v2140_v48, %v1148_v46 }
 0x2f7   : > { %v1435_v53 = vpop.f32.mrf.mxu1 }
 0x2f8   : > { %1520 = vst.msk [vmem:[#allocation2 + $0x28] sm:$0xff] %vm1514_vm3, %v1503_v51  ;;  %v1508_v56 = vadd.f32 %v1492_v49, %v1476_v14  ;;  %v1474_v15 = vadd.f32 %v1435_v53, %v1140_v50 }
 0x2f9   : > { %v2141_v59 = vpop.f32.mrf.mxu1 }
 0x2fa   : > { %1525 = vst.msk [vmem:[#allocation2 + $0x50] sm:$0xff] %vm1514_vm3, %v1508_v56  ;;  %v1506_v16 = vadd.f32 %v1490_v54, %v1474_v15  ;;  %v1477_v60 = vadd.f32 %v2141_v59, %v1151_v52 }
 0x2fb   : > { %v1438_v4 = vpop.f32.mrf.mxu1 }
 0x2fc   : > { %1523 = vst.msk [vmem:[#allocation2 + $0x40] sm:$0xff] %vm1514_vm3, %v1506_v16  ;;  %v1509_v17 = vadd.f32 %v1493_v2, %v1477_v60  ;;  %v1475_v61 = vadd.f32 %v1438_v4, %v1143_v3 }
 0x2fd   : > { %v2144_v57 = vpop.f32.mrf.mxu1 }
 0x2fe   : > { %1526 = vst.msk [vmem:[#allocation2 + $0x58] sm:$0xff] %vm1514_vm3, %v1509_v17  ;;  %v1507_v18 = vadd.f32 %v1491_v5, %v1475_v61  ;;  %v1480_v62 = vadd.f32 %v2144_v57, %v1164_v6 }
 0x2ff   : > { %v1451_v24 = vpop.f32.mrf.mxu1 }
 0x300   : > { %1524 = vst.msk [vmem:[#allocation2 + $0x48] sm:$0xff] %vm1514_vm3, %v1507_v18  ;;  %v1512_v19 = vadd.f32 %v1496_v58, %v1480_v62  ;;  %v1478_v63 = vadd.f32 %v1451_v24, %v1156_v23 }
 0x301   : > { %v2145_v27 = vpop.f32.mrf.mxu1 }
 0x302   : > { %1529 = vst.msk [vmem:[#allocation2 + $0x70] sm:$0xff] %vm1514_vm3, %v1512_v19  ;;  %v1510_v20 = vadd.f32 %v1494_v25, %v1478_v63  ;;  %v1481_v0 = vadd.f32 %v2145_v27, %v1167_v26 }
 0x303   : > { %v1454_v29 = vpop.f32.mrf.mxu1 }
 0x304   : > { %1527 = vst.msk [vmem:[#allocation2 + $0x60] sm:$0xff] %vm1514_vm3, %v1510_v20  ;;  %v1513_v8 = vadd.f32 %v1497_v28, %v1481_v0  ;;  %v1479_v31 = vadd.f32 %v1454_v29, %v1159_v7  ;;  %1534 = sbr.rel (%p1885_p13) target bundleno = 797 (0x31d), region = 85 }
 0x306   : > { %1530 = vst.msk [vmem:[#allocation2 + $0x78] sm:$0xff] %vm1514_vm3, %v1513_v8  ;;  %v1511_v21 = vadd.f32 %v1495_v30, %v1479_v31 }
 0x308   : > { %1528 = vst.msk [vmem:[#allocation2 + $0x68] sm:$0xff] %vm1514_vm3, %v1511_v21 }
 0x309   : > { %v1535_v1 = vld [vmem:[#allocation2] sm:$0xff]  ;;  %v1536_v55 = vld [vmem:[#allocation2 + $0x8] sm:$0xff]  ;;  %v1537_v9 = vld [vmem:[#allocation2 + $0x10] sm:$0xff]  ;;  %vm1663_vm4 = vcmask 257024  }
 0x30a   : > { %v1551_v22 = vld [vmem:[%s2495_s7] sm:$0xff]  ;;  %v1552_v33 = vld [vmem:[%s2495_s7 + $0x8] sm:$0xff]  ;;  %v1553_v34 = vld [vmem:[%s2495_s7 + $0x10] sm:$0xff] }
 0x30b   : > { %v1567_v32 = vadd.f32 %v1551_v22, %v1535_v1  ;;  %v1568_v35 = vadd.f32 %v1552_v33, %v1536_v55  ;;  %v1569_v10 = vadd.f32 %v1553_v34, %v1537_v9  ;;  %v1538_v36 = vld [vmem:[#allocation2 + $0x18] sm:$0xff]  ;;  %v1539_v38 = vld [vmem:[#allocation2 + $0x20] sm:$0xff]  ;;  %v1540_v41 = vld [vmem:[#allocation2 + $0x28] sm:$0xff] }
 0x30c   : > { %v1554_v37 = vld [vmem:[%s2495_s7 + $0x18] sm:$0xff]  ;;  %v1555_v40 = vld [vmem:[%s2495_s7 + $0x20] sm:$0xff]  ;;  %v1556_v42 = vld [vmem:[%s2495_s7 + $0x28] sm:$0xff] }
 0x30d   : > { %v1583_v39 = vmax.f32 %v1567_v32, 0.0  ;;  %v1570_v11 = vadd.f32 %v1554_v37, %v1538_v36  ;;  %v1584_v43 = vmax.f32 %v1568_v35, 0.0  ;;  %v1585_v12 = vmax.f32 %v1569_v10, 0.0  ;;  %v1541_v46 = vld [vmem:[#allocation2 + $0x30] sm:$0xff]  ;;  %v1542_v13 = vld [vmem:[#allocation2 + $0x38] sm:$0xff]  ;;  %v1543_v14 = vld [vmem:[#allocation2 + $0x40] sm:$0xff] }
 0x30e   : > { %v1571_v44 = vadd.f32 %v1555_v40, %v1539_v38  ;;  %v1572_v45 = vadd.f32 %v1556_v42, %v1540_v41  ;;  %v1557_v47 = vld [vmem:[%s2495_s7 + $0x30] sm:$0xff]  ;;  %v1558_v51 = vld [vmem:[%s2495_s7 + $0x38] sm:$0xff]  ;;  %v1559_v53 = vld [vmem:[%s2495_s7 + $0x40] sm:$0xff] }
 0x30f   : > { %v1905_v48 = vpack.c.bf16 %v1583_v39, %v1583_v39  ;;  %v1586_v49 = vmax.f32 %v1570_v11, 0.0  ;;  %v1573_v50 = vadd.f32 %v1557_v47, %v1541_v46  ;;  %v1906_v54 = vpack.c.bf16 %v1584_v43, %v1584_v43  ;;  %v1544_v59 = vld [vmem:[#allocation2 + $0x48] sm:$0xff]  ;;  %v1545_v3 = vld [vmem:[#allocation2 + $0x50] sm:$0xff]  ;;  %v1546_v17 = vld [vmem:[#allocation2 + $0x58] sm:$0xff] }
 0x310   : > { %v1907_v52 = vpack.c.bf16 %v1585_v12, %v1585_v12  ;;  %v1587_v56 = vmax.f32 %v1571_v44, 0.0  ;;  %v1588_v15 = vmax.f32 %v1572_v45, 0.0  ;;  %v1560_v2 = vld [vmem:[%s2495_s7 + $0x48] sm:$0xff]  ;;  %v1574_v4 = vadd.f32 %v1558_v51, %v1542_v13  ;;  %v1561_v6 = vld [vmem:[%s2495_s7 + $0x50] sm:$0xff]  ;;  %v1562_v61 = vld [vmem:[%s2495_s7 + $0x58] sm:$0xff] }
 0x311   : > { %1664 = vst.msk [vmem:[%s2500_s18] sm:$0xf] %vm1663_vm4, %v1905_v48  ;;  %v1908_v16 = vpack.c.bf16 %v1586_v49, %v1586_v49  ;;  %v1589_v60 = vmax.f32 %v1573_v50, 0.0  ;;  %v1575_v5 = vadd.f32 %v1559_v53, %v1543_v14  ;;  %1665 = vst.msk [vmem:[%s2500_s18 + $0x4] sm:$0xf] %vm1663_vm4, %v1906_v54  ;;  %v1576_v23 = vadd.f32 %v1560_v2, %v1544_v59  ;;  %v1547_v62 = vld [vmem:[#allocation2 + $0x60] sm:$0xff] }
 0x312   : > { %1666 = vst.msk [vmem:[%s2500_s18 + $0x8] sm:$0xf] %vm1663_vm4, %v1907_v52  ;;  %v1909_v57 = vpack.c.bf16 %v1587_v56, %v1587_v56  ;;  %v1910_v58 = vpack.c.bf16 %v1588_v15, %v1588_v15  ;;  %v1577_v18 = vadd.f32 %v1561_v6, %v1545_v3  ;;  %v1563_v24 = vld [vmem:[%s2495_s7 + $0x60] sm:$0xff]  ;;  %v1548_v25 = vld [vmem:[#allocation2 + $0x68] sm:$0xff]  ;;  %v1590_v19 = vmax.f32 %v1574_v4, 0.0  ;;  %v1549_v7 = vld [vmem:[#allocation2 + $0x70] sm:$0xff] }
 0x313   : > { %1667 = vst.msk [vmem:[%s2500_s18 + $0xc] sm:$0xf] %vm1663_vm4, %v1908_v16  ;;  %v1911_v26 = vpack.c.bf16 %v1589_v60, %v1589_v60  ;;  %v1591_v63 = vmax.f32 %v1575_v5, 0.0  ;;  %v1578_v27 = vadd.f32 %v1562_v61, %v1546_v17  ;;  %v1564_v28 = vld [vmem:[%s2495_s7 + $0x68] sm:$0xff]  ;;  %v1565_v20 = vld [vmem:[%s2495_s7 + $0x70] sm:$0xff]  ;;  %v1592_v0 = vmax.f32 %v1576_v23, 0.0 }
 0x314   : > { %1668 = vst.msk [vmem:[%s2500_s18 + $0x10] sm:$0xf] %vm1663_vm4, %v1909_v57  ;;  %1669 = vst.msk [vmem:[%s2500_s18 + $0x14] sm:$0xf] %vm1663_vm4, %v1910_v58  ;;  %v1593_v29 = vmax.f32 %v1577_v18, 0.0  ;;  %v1579_v30 = vadd.f32 %v1563_v24, %v1547_v62  ;;  %v1580_v8 = vadd.f32 %v1564_v28, %v1548_v25  ;;  %v1550_v31 = vld [vmem:[#allocation2 + $0x78] sm:$0xff]  ;;  %v1912_v1 = vpack.c.bf16 %v1590_v19, %v1590_v19 }
 0x315   : > { %v1566_v21 = vld [vmem:[%s2495_s7 + $0x78] sm:$0xff]  ;;  %1670 = vst.msk [vmem:[%s2500_s18 + $0x18] sm:$0xf] %vm1663_vm4, %v1911_v26  ;;  %v1913_v22 = vpack.c.bf16 %v1591_v63, %v1591_v63  ;;  %v1594_v55 = vmax.f32 %v1578_v27, 0.0  ;;  %v1581_v32 = vadd.f32 %v1565_v20, %v1549_v7  ;;  %v1914_v33 = vpack.c.bf16 %v1592_v0, %v1592_v0 }
 0x316   : > { %v1915_v9 = vpack.c.bf16 %v1593_v29, %v1593_v29  ;;  %v1595_v34 = vmax.f32 %v1579_v30, 0.0  ;;  %v1596_v35 = vmax.f32 %v1580_v8, 0.0  ;;  %1671 = vst.msk [vmem:[%s2500_s18 + $0x1c] sm:$0xf] %vm1663_vm4, %v1912_v1  ;;  %v1582_v37 = vadd.f32 %v1566_v21, %v1550_v31 }
 0x317   : > { %1672 = vst.msk [vmem:[%s2500_s18 + $0x20] sm:$0xf] %vm1663_vm4, %v1913_v22  ;;  %v1916_v10 = vpack.c.bf16 %v1594_v55, %v1594_v55  ;;  %v1597_v36 = vmax.f32 %v1581_v32, 0.0  ;;  %1673 = vst.msk [vmem:[%s2500_s18 + $0x24] sm:$0xf] %vm1663_vm4, %v1914_v33 }
 0x318   : > { %1674 = vst.msk [vmem:[%s2500_s18 + $0x28] sm:$0xf] %vm1663_vm4, %v1915_v9  ;;  %v1917_v38 = vpack.c.bf16 %v1595_v34, %v1595_v34  ;;  %v1918_v39 = vpack.c.bf16 %v1596_v35, %v1596_v35  ;;  %v1598_v40 = vmax.f32 %v1582_v37, 0.0 }
 0x319   : > { %1675 = vst.msk [vmem:[%s2500_s18 + $0x2c] sm:$0xf] %vm1663_vm4, %v1916_v10  ;;  %v1919_v11 = vpack.c.bf16 %v1597_v36, %v1597_v36 }
 0x31a   : > { %1676 = vst.msk [vmem:[%s2500_s18 + $0x30] sm:$0xf] %vm1663_vm4, %v1917_v38  ;;  %1677 = vst.msk [vmem:[%s2500_s18 + $0x34] sm:$0xf] %vm1663_vm4, %v1918_v39  ;;  %v1920_v41 = vpack.c.bf16 %v1598_v40, %v1598_v40 }
 0x31b   : > { %1678 = vst.msk [vmem:[%s2500_s18 + $0x38] sm:$0xf] %vm1663_vm4, %v1919_v11 }
 0x31c   : > { %1679 = vst.msk [vmem:[%s2500_s18 + $0x3c] sm:$0xf] %vm1663_vm4, %v1920_v41 }
 0x31d PF: > { %s14_s21 = sadd.s32 1, %s2294_s21   ;;  %s2810_s15 = smov %s2274_s16 }
 0x31e   : > { %p11_p0 = scmp.ge.s32.totalorder %s14_s21, 6   ;;  %s2811_s16 = smov %s2373_s28 }
 0x31f   : > { %s2812_s17 = smov %s2286_s19  ;;  %s2813_s18 = smov %s2290_s20 }
 0x320   : > { %s2814_s19 = smov %s2817_s22  ;;  %s2815_s20 = smov %s2821_s23 }
 0x321   :  { %13 = sbr.rel (!%p11_p0) target bundleno = 4 (0x4), region = 130 }

// kernel: hetero_classifier_forward.3
= control target key start
LH: loop header
LB: loop body
LE: loop exit
PB: predicated region body
PF: predicated region fallthrough
CT: control target
= control target key end

     0   :  { %s2914_s0 = inlined_call_operand.vmem [shape: bf16[3,256,256], index: 0, kind: input, shape index: {}]   ;;  %s2915_s1 = inlined_call_operand.vmem [shape: bf16[256,32], index: 1, kind: input, shape index: {}]   ;;  %s2916_s2 = inlined_call_operand.vmem [shape: bf16[3,32,32], index: 2, kind: input, shape index: {}]   ;;  %s2917_s3 = inlined_call_operand.vmem [shape: f32[256,32], index: 3, kind: input, shape index: {}]   ;;  %s2918_s4 = inlined_call_operand.vmem [shape: f32[2,8,128], index: 4, kind: input, shape index: {}]   ;;  %s2919_s5 = inlined_call_operand.vmem [shape: f32[2,8,32], index: 5, kind: output, shape index: {}]  }
   0x1   :  { %2920 = sst [smem:[#allocation4_spill]] %s2914_s0 }
   0x2   :  { %s2433_s18 = smov 0   ;;  %s2435_s19 = smov 0  }
   0x3   :  { %s2437_s20 = smov 0   ;;  %s2439_s21 = smov 0  }
   0x4   :  { %s2441_s22 = smov 0   ;;  %s2443_s23 = smov 0  }
   0x5   :  { %s2445_s24 = smov 0  }
   0x6 LB: > { %s24_s25 = sadd.s32 1, %s2390_s22  ;;  %s27_s26 = sadd.s32 1, %s2394_s23  ;;  %s2398_s24 = sphi %s2445_s24, %s15_s24   ;;  %s2394_s23 = sphi %s2443_s23, %s2927_s23   ;;  %s2390_s22 = sphi %s2441_s22, %s2926_s22   ;;  %s2386_s21 = sphi %s2439_s21, %s2925_s21   ;;  %s2382_s20 = sphi %s2437_s20, %s2924_s20   ;;  %s2378_s19 = sphi %s2435_s19, %s2923_s19   ;;  %s2374_s18 = sphi %s2433_s18, %s2922_s18  }
   0x7   : > { %p25_p0 = scmp.ge.s32.totalorder %s24_s25, 2  ;;  %p43_p1 = scmp.ne.s32.totalorder %s2378_s19, %s2374_s18 }
   0x8   : > { %p44_p2 = scmp.eq.s32.totalorder %s2398_s24, 0  ;;  %s36_s30 = sadd.s32 1, %s2378_s19 }
   0x9   : > { %s2929_s25 = smov (%p25_p0, %s24_s25), 0  ;;  %s2931_s26 = smov (!%p25_p0, %s27_s26), %s2394_s23 }
   0xa   : > { %p45_p3 = por %p44_p2, %p43_p1  ;;  %p29_p4 = scmp.ge.s32.totalorder %s2931_s26, 2 }
   0xb   : > { %s32_s27 = ssub.s32 %s2390_s22, %s2929_s25  ;;  %p1841_p6 = scmp.ge.s32.totalorder %s2398_s24, 4 }
   0xc   : > { %s2933_s26 = smov (%p29_p4, %s2931_s26), 0 }
   0xd   : > { %s31_s28 = ssub.s32 %s2394_s23, %s2933_s26  ;;  %197 = sbr.rel (%p1841_p6) target bundleno = 60 (0x3c), region = 20 }
   0xe   : > { %s33_s29 = sor.u32 %s32_s27, %s31_s28 }
   0xf   : > { %p34_p5 = scmp.eq.s32.totalorder %s33_s29, 0 }
  0x11   : > { %s2484_s6 = scalar_select %p34_p5, %s2378_s19, %s36_s30  }
  0x12   : > { %200 = sbr.rel (!%p45_p3) target bundleno = 60 (0x3c), region = 24  ;;  %s202_s7 = sand.u32 (%p45_p3), 1, %s2378_s19  }
  0x13   : > { %s1958_s8 = sshll.u32 (%p45_p3), %s2394_s23, 5  ;;  %s2245_s9 = smul.u32 (%p45_p3), 192, %s202_s7 }
  0x14   : > { %s207_s10 = sadd.s32 (%p45_p3), %s2390_s22, %s1958_s8  ;;  %s2921_s0 = sld [smem:[#allocation4_spill]] (%p45_p3) }
  0x15   : > { %s1844_s11 = sshll.u32 (%p45_p3), %s207_s10, 2  ;;  %s2498_s15 = scalar_lea.vmem (%p45_p3), [#allocation3], %s2245_s9 }
  0x1a   : > { %s2493_s14 = scalar_lea.vmem %s2921_s0, %s1844_s11 }
  0x1b   : > { %v226_v0 = vld [vmem:[%s2493_s14] sm:$0xf]  ;;  %v228_v1 = vld [vmem:[%s2493_s14 + $0x8] sm:$0xf]  ;;  %v230_v2 = vld [vmem:[%s2493_s14 + $0x10] sm:$0xf] }
  0x1c   : > { %227 = vst [vmem:[%s2498_s15] sm:$0xf] %v226_v0  ;;  %229 = vst [vmem:[%s2498_s15 + $0x4] sm:$0xf] %v228_v1  ;;  %v232_v3 = vld [vmem:[%s2493_s14 + $0x18] sm:$0xf] }
  0x1d   : > { %231 = vst [vmem:[%s2498_s15 + $0x8] sm:$0xf] %v230_v2  ;;  %v234_v4 = vld [vmem:[%s2493_s14 + $0x20] sm:$0xf]  ;;  %v236_v5 = vld [vmem:[%s2493_s14 + $0x28] sm:$0xf] }
  0x1e   : > { %233 = vst [vmem:[%s2498_s15 + $0xc] sm:$0xf] %v232_v3  ;;  %235 = vst [vmem:[%s2498_s15 + $0x10] sm:$0xf] %v234_v4  ;;  %v238_v6 = vld [vmem:[%s2493_s14 + $0x30] sm:$0xf] }
  0x1f   : > { %237 = vst [vmem:[%s2498_s15 + $0x14] sm:$0xf] %v236_v5  ;;  %v240_v7 = vld [vmem:[%s2493_s14 + $0x38] sm:$0xf]  ;;  %v242_v8 = vld [vmem:[%s2493_s14 + $0x40] sm:$0xf] }
  0x20   : > { %239 = vst [vmem:[%s2498_s15 + $0x18] sm:$0xf] %v238_v6  ;;  %241 = vst [vmem:[%s2498_s15 + $0x1c] sm:$0xf] %v240_v7  ;;  %v244_v9 = vld [vmem:[%s2493_s14 + $0x48] sm:$0xf] }
  0x21   : > { %243 = vst [vmem:[%s2498_s15 + $0x20] sm:$0xf] %v242_v8  ;;  %v246_v10 = vld [vmem:[%s2493_s14 + $0x50] sm:$0xf]  ;;  %v248_v11 = vld [vmem:[%s2493_s14 + $0x58] sm:$0xf] }
  0x22   : > { %245 = vst [vmem:[%s2498_s15 + $0x24] sm:$0xf] %v244_v9  ;;  %247 = vst [vmem:[%s2498_s15 + $0x28] sm:$0xf] %v246_v10  ;;  %v250_v12 = vld [vmem:[%s2493_s14 + $0x60] sm:$0xf] }
  0x23   : > { %249 = vst [vmem:[%s2498_s15 + $0x2c] sm:$0xf] %v248_v11  ;;  %v252_v13 = vld [vmem:[%s2493_s14 + $0x68] sm:$0xf]  ;;  %v254_v14 = vld [vmem:[%s2493_s14 + $0x70] sm:$0xf] }
  0x24   : > { %251 = vst [vmem:[%s2498_s15 + $0x30] sm:$0xf] %v250_v12  ;;  %253 = vst [vmem:[%s2498_s15 + $0x34] sm:$0xf] %v252_v13  ;;  %v256_v15 = vld [vmem:[%s2493_s14 + $0x78] sm:$0xf] }
  0x25   : > { %255 = vst [vmem:[%s2498_s15 + $0x38] sm:$0xf] %v254_v14  ;;  %v258_v16 = vld [vmem:[%s2493_s14 + $0x100] sm:$0xf]  ;;  %v260_v17 = vld [vmem:[%s2493_s14 + $0x108] sm:$0xf] }
  0x26   : > { %257 = vst [vmem:[%s2498_s15 + $0x3c] sm:$0xf] %v256_v15  ;;  %259 = vst [vmem:[%s2498_s15 + $0x40] sm:$0xf] %v258_v16  ;;  %v262_v18 = vld [vmem:[%s2493_s14 + $0x110] sm:$0xf] }
  0x27   : > { %261 = vst [vmem:[%s2498_s15 + $0x44] sm:$0xf] %v260_v17  ;;  %v264_v19 = vld [vmem:[%s2493_s14 + $0x118] sm:$0xf]  ;;  %v266_v20 = vld [vmem:[%s2493_s14 + $0x120] sm:$0xf] }
  0x28   : > { %263 = vst [vmem:[%s2498_s15 + $0x48] sm:$0xf] %v262_v18  ;;  %265 = vst [vmem:[%s2498_s15 + $0x4c] sm:$0xf] %v264_v19  ;;  %v268_v21 = vld [vmem:[%s2493_s14 + $0x128] sm:$0xf] }
  0x29   : > { %267 = vst [vmem:[%s2498_s15 + $0x50] sm:$0xf] %v266_v20  ;;  %v270_v22 = vld [vmem:[%s2493_s14 + $0x130] sm:$0xf]  ;;  %v272_v23 = vld [vmem:[%s2493_s14 + $0x138] sm:$0xf] }
  0x2a   : > { %269 = vst [vmem:[%s2498_s15 + $0x54] sm:$0xf] %v268_v21  ;;  %271 = vst [vmem:[%s2498_s15 + $0x58] sm:$0xf] %v270_v22  ;;  %v274_v24 = vld [vmem:[%s2493_s14 + $0x140] sm:$0xf] }
  0x2b   : > { %273 = vst [vmem:[%s2498_s15 + $0x5c] sm:$0xf] %v272_v23  ;;  %v276_v25 = vld [vmem:[%s2493_s14 + $0x148] sm:$0xf]  ;;  %v278_v26 = vld [vmem:[%s2493_s14 + $0x150] sm:$0xf] }
  0x2c   : > { %275 = vst [vmem:[%s2498_s15 + $0x60] sm:$0xf] %v274_v24  ;;  %277 = vst [vmem:[%s2498_s15 + $0x64] sm:$0xf] %v276_v25  ;;  %v280_v27 = vld [vmem:[%s2493_s14 + $0x158] sm:$0xf] }
  0x2d   : > { %279 = vst [vmem:[%s2498_s15 + $0x68] sm:$0xf] %v278_v26  ;;  %v282_v28 = vld [vmem:[%s2493_s14 + $0x160] sm:$0xf]  ;;  %v284_v29 = vld [vmem:[%s2493_s14 + $0x168] sm:$0xf] }
  0x2e   : > { %281 = vst [vmem:[%s2498_s15 + $0x6c] sm:$0xf] %v280_v27  ;;  %283 = vst [vmem:[%s2498_s15 + $0x70] sm:$0xf] %v282_v28  ;;  %v286_v30 = vld [vmem:[%s2493_s14 + $0x170] sm:$0xf] }
  0x2f   : > { %285 = vst [vmem:[%s2498_s15 + $0x74] sm:$0xf] %v284_v29  ;;  %v288_v31 = vld [vmem:[%s2493_s14 + $0x178] sm:$0xf]  ;;  %v290_v32 = vld [vmem:[%s2493_s14 + $0x200] sm:$0xf] }
  0x30   : > { %287 = vst [vmem:[%s2498_s15 + $0x78] sm:$0xf] %v286_v30  ;;  %289 = vst [vmem:[%s2498_s15 + $0x7c] sm:$0xf] %v288_v31  ;;  %v292_v33 = vld [vmem:[%s2493_s14 + $0x208] sm:$0xf] }
  0x31   : > { %291 = vst [vmem:[%s2498_s15 + $0x80] sm:$0xf] %v290_v32  ;;  %v294_v34 = vld [vmem:[%s2493_s14 + $0x210] sm:$0xf]  ;;  %v296_v35 = vld [vmem:[%s2493_s14 + $0x218] sm:$0xf] }
  0x32   : > { %293 = vst [vmem:[%s2498_s15 + $0x84] sm:$0xf] %v292_v33  ;;  %295 = vst [vmem:[%s2498_s15 + $0x88] sm:$0xf] %v294_v34  ;;  %v298_v36 = vld [vmem:[%s2493_s14 + $0x220] sm:$0xf] }
  0x33   : > { %297 = vst [vmem:[%s2498_s15 + $0x8c] sm:$0xf] %v296_v35  ;;  %v300_v37 = vld [vmem:[%s2493_s14 + $0x228] sm:$0xf]  ;;  %v302_v38 = vld [vmem:[%s2493_s14 + $0x230] sm:$0xf] }
  0x34   : > { %299 = vst [vmem:[%s2498_s15 + $0x90] sm:$0xf] %v298_v36  ;;  %301 = vst [vmem:[%s2498_s15 + $0x94] sm:$0xf] %v300_v37  ;;  %v304_v39 = vld [vmem:[%s2493_s14 + $0x238] sm:$0xf] }
  0x35   : > { %303 = vst [vmem:[%s2498_s15 + $0x98] sm:$0xf] %v302_v38  ;;  %v306_v40 = vld [vmem:[%s2493_s14 + $0x240] sm:$0xf]  ;;  %v308_v41 = vld [vmem:[%s2493_s14 + $0x248] sm:$0xf] }
  0x36   : > { %305 = vst [vmem:[%s2498_s15 + $0x9c] sm:$0xf] %v304_v39  ;;  %307 = vst [vmem:[%s2498_s15 + $0xa0] sm:$0xf] %v306_v40  ;;  %v310_v42 = vld [vmem:[%s2493_s14 + $0x250] sm:$0xf] }
  0x37   : > { %309 = vst [vmem:[%s2498_s15 + $0xa4] sm:$0xf] %v308_v41  ;;  %v312_v43 = vld [vmem:[%s2493_s14 + $0x258] sm:$0xf]  ;;  %v314_v44 = vld [vmem:[%s2493_s14 + $0x260] sm:$0xf] }
  0x38   : > { %311 = vst [vmem:[%s2498_s15 + $0xa8] sm:$0xf] %v310_v42  ;;  %313 = vst [vmem:[%s2498_s15 + $0xac] sm:$0xf] %v312_v43  ;;  %v316_v45 = vld [vmem:[%s2493_s14 + $0x268] sm:$0xf] }
  0x39   : > { %315 = vst [vmem:[%s2498_s15 + $0xb0] sm:$0xf] %v314_v44  ;;  %v318_v46 = vld [vmem:[%s2493_s14 + $0x270] sm:$0xf]  ;;  %v320_v47 = vld [vmem:[%s2493_s14 + $0x278] sm:$0xf] }
  0x3a   : > { %317 = vst [vmem:[%s2498_s15 + $0xb4] sm:$0xf] %v316_v45  ;;  %319 = vst [vmem:[%s2498_s15 + $0xb8] sm:$0xf] %v318_v46 }
  0x3b   : > { %321 = vst [vmem:[%s2498_s15 + $0xbc] sm:$0xf] %v320_v47 }
  0x3c PF: > { %p1845_p7 = scmp.ge.s32.totalorder %s2398_s24, 1  ;;  %p465_p8 = scmp.lt.s32.totalorder %s2398_s24, 5 }
  0x3e   : > { %p466_p9 = pnand %p1845_p7, %p465_p8 }
  0x3f   : > { %s472_s16 = sand.u32 (!%p466_p9), 1, %s2374_s18   ;;  %s1846_s17 = sshll.u32 (!%p466_p9), %s2382_s20, 4 }
  0x40   : > { %469 = sbr.rel (%p466_p9) target bundleno = 1017 (0x3f9), region = 77  ;;  %p514_p10 = scmp.lt.s32.totalorder (!%p466_p9), %s1846_s17, 31 }
  0x41   : > { %s2246_s27 = smul.u32 (!%p466_p9), 192, %s472_s16  ;;  %s1848_s28 = sshll.u32 (!%p466_p9), %s2386_s21, 4 }
  0x42   : > { %p525_p11 = scmp.lt.s32.totalorder (!%p466_p9), %s2386_s21, 1  ;;  %p520_p12 = scmp.lt.s32.totalorder (!%p466_p9), %s1848_s28, 31 }
  0x43   : > { %p1852_p13 = scmp.ne.s32.totalorder (!%p466_p9), %s2382_s20, 0 }
  0x45   : > { %s2935_s17 = smov (!%p514_p10, %s1846_s17), 31  ;;  %s2937_s28 = smov (!%p520_p12, %s1848_s28), 31 }
  0x46   : > { %s1847_s29 = sshll.u32 %s2935_s17, 2  ;;  %s1849_s9 = sshll.u32 %s2937_s28, 3 }
  0x47   : > { %s2602_s8 = scalar_lea.vmem %s2915_s1, %s1847_s29  ;;  %s2607_s12 = scalar_lea.vmem %s2917_s3, %s1849_s9 }
  0x48   : > { %s2939_s21 = smov (!%p525_p11, %s2386_s21), 1  ;;  %s2620_s29 = scalar_lea.vmem [#allocation3], %s2246_s27 }
  0x49   : > { %s1850_s18 = sshll.u32 %s2939_s21, 3  ;;  %537 = sbr.rel (%p1852_p13) target bundleno = 87 (0x57), region = 85 }
  0x4a   : > { %s2613_s15 = scalar_lea.vmem %s2918_s4, %s1850_s18  ;;  %s2618_s0 = scalar_lea.vmem %s2919_s5, %s1850_s18 }
  0x4e   : > { %vm538_vm0 = vcmask 261120   ;;  %v2400_v48 = vmov 0.0  }
  0x4f   : > { %539 = vst.msk [vmem:[#allocation2] sm:$0xff] %vm538_vm0, %v2400_v48  ;;  %540 = vst.msk [vmem:[#allocation2 + $0x8] sm:$0xff] %vm538_vm0, %v2400_v48 }
  0x50   : > { %541 = vst.msk [vmem:[#allocation2 + $0x10] sm:$0xff] %vm538_vm0, %v2400_v48  ;;  %542 = vst.msk [vmem:[#allocation2 + $0x18] sm:$0xff] %vm538_vm0, %v2400_v48 }
  0x51   : > { %543 = vst.msk [vmem:[#allocation2 + $0x20] sm:$0xff] %vm538_vm0, %v2400_v48  ;;  %544 = vst.msk [vmem:[#allocation2 + $0x28] sm:$0xff] %vm538_vm0, %v2400_v48 }
  0x52   : > { %545 = vst.msk [vmem:[#allocation2 + $0x30] sm:$0xff] %vm538_vm0, %v2400_v48  ;;  %546 = vst.msk [vmem:[#allocation2 + $0x38] sm:$0xff] %vm538_vm0, %v2400_v48 }
  0x53   : > { %547 = vst.msk [vmem:[#allocation2 + $0x40] sm:$0xff] %vm538_vm0, %v2400_v48  ;;  %548 = vst.msk [vmem:[#allocation2 + $0x48] sm:$0xff] %vm538_vm0, %v2400_v48 }
  0x54   : > { %549 = vst.msk [vmem:[#allocation2 + $0x50] sm:$0xff] %vm538_vm0, %v2400_v48  ;;  %550 = vst.msk [vmem:[#allocation2 + $0x58] sm:$0xff] %vm538_vm0, %v2400_v48 }
  0x55   : > { %551 = vst.msk [vmem:[#allocation2 + $0x60] sm:$0xff] %vm538_vm0, %v2400_v48  ;;  %552 = vst.msk [vmem:[#allocation2 + $0x68] sm:$0xff] %vm538_vm0, %v2400_v48 }
  0x56   : > { %553 = vst.msk [vmem:[#allocation2 + $0x70] sm:$0xff] %vm538_vm0, %v2400_v48  ;;  %554 = vst.msk [vmem:[#allocation2 + $0x78] sm:$0xff] %vm538_vm0, %v2400_v48 }
  0x57 PF: > { %v2640_v49 = vld [vmem:[%s2602_s8 + $0x38] sm:$0xff]   ;;  %v2643_v50 = vld [vmem:[%s2602_s8 + $0x30] sm:$0xff]   ;;  %v2652_v51 = vld [vmem:[%s2602_s8 + $0x28] sm:$0xff]   ;;  %vm979_vm1 = vcmask 261120   ;;  %p1955_p0 = scmp.ne.s32.totalorder %s2382_s20, 1 }
  0x58   : > { %2054 = vmatprep.subr.bf16.mxu0 %v2640_v49  ;;  %2086 = vmatprep.subr.bf16.mxu1 %v2640_v49  ;;  %v2657_v52 = vld [vmem:[%s2602_s8 + $0x20] sm:$0xff]   ;;  %v2668_v55 = vld [vmem:[%s2602_s8 + $0x18] sm:$0xff]   ;;  %v2675_v56 = vld [vmem:[%s2602_s8 + $0x10] sm:$0xff]  }
  0x59   : > { %2055 = vmatpush3.bf16.msra.mxu0 %v2640_v49  ;;  %2087 = vmatpush3.bf16.msra.mxu1 %v2640_v49  ;;  %v2314_v53 = vld [vmem:[%s2620_s29] sm:$0xff]   ;;  %v2682_v57 = vld [vmem:[%s2602_s8 + $0x8] sm:$0xff]   ;;  %v2330_v59 = vld [vmem:[%s2916_s2 + $0x18] sm:$0xff]  }
  0x5a   : > { %2056 = vmatprep.subr.bf16.mxu0 %v2643_v50  ;;  %2088 = vmatprep.subr.bf16.mxu1 %v2643_v50  ;;  %v2315_v54 = vld [vmem:[%s2620_s29 + $0x40] sm:$0xff]   ;;  %v2316_v60 = vld [vmem:[%s2620_s29 + $0x8] sm:$0xff]   ;;  %v2318_v62 = vld [vmem:[%s2620_s29 + $0x10] sm:$0xff]  }
  0x5b   : > { %2070 = vmatprep.mubr.bf16.mxu0 %v2314_v53  ;;  %2102 = vmatprep.mubr.bf16.mxu1 %v2315_v54  ;;  %v2689_v58 = vld [vmem:[%s2602_s8] sm:$0xff]   ;;  %v2317_v61 = vld [vmem:[%s2620_s29 + $0x48] sm:$0xff]   ;;  %v2319_v63 = vld [vmem:[%s2620_s29 + $0x50] sm:$0xff]  }
  0x5c   : > { %v2331_v0 = vld [vmem:[%s2916_s2 + $0x10] sm:$0xff]   ;;  %v2320_v1 = vld [vmem:[%s2620_s29 + $0x18] sm:$0xff]   ;;  %v2322_v3 = vld [vmem:[%s2620_s29 + $0x20] sm:$0xff]  }
  0x5d   : > { %2057 = vmatpush3.bf16.msra.mxu0 %v2643_v50  ;;  %2089 = vmatpush3.bf16.msra.mxu1 %v2643_v50  ;;  %v2321_v2 = vld [vmem:[%s2620_s29 + $0x58] sm:$0xff]   ;;  %v2323_v4 = vld [vmem:[%s2620_s29 + $0x60] sm:$0xff]   ;;  %v2324_v5 = vld [vmem:[%s2620_s29 + $0x28] sm:$0xff]  }
  0x5e   : > { %2058 = vmatprep.subr.bf16.mxu0 %v2652_v51  ;;  %2090 = vmatprep.subr.bf16.mxu1 %v2652_v51  ;;  %v2325_v6 = vld [vmem:[%s2620_s29 + $0x68] sm:$0xff]   ;;  %v2326_v7 = vld [vmem:[%s2620_s29 + $0x30] sm:$0xff]   ;;  %v2328_v9 = vld [vmem:[%s2620_s29 + $0x38] sm:$0xff]  }
  0x5f   : > { %v2327_v8 = vld [vmem:[%s2620_s29 + $0x70] sm:$0xff]   ;;  %v2329_v10 = vld [vmem:[%s2620_s29 + $0x78] sm:$0xff]   ;;  %v2332_v11 = vld [vmem:[%s2916_s2 + $0x8] sm:$0xff]  }
  0x60   : > { %v2333_v12 = vld [vmem:[%s2916_s2] sm:$0xff]  }
  0x61   : > { %2059 = vmatpush3.bf16.msra.mxu0 %v2652_v51  ;;  %2091 = vmatpush3.bf16.msra.mxu1 %v2652_v51 }
  0x62   : > { %2060 = vmatprep.subr.bf16.mxu0 %v2657_v52  ;;  %2092 = vmatprep.subr.bf16.mxu1 %v2657_v52 }
  0x65   : > { %2061 = vmatpush3.bf16.msra.mxu0 %v2657_v52  ;;  %2093 = vmatpush3.bf16.msra.mxu1 %v2657_v52 }
  0x66   : > { %2062 = vmatprep.subr.bf16.mxu0 %v2668_v55  ;;  %2094 = vmatprep.subr.bf16.mxu1 %v2668_v55 }
  0x69   : > { %2063 = vmatpush3.bf16.msra.mxu0 %v2668_v55  ;;  %2095 = vmatpush3.bf16.msra.mxu1 %v2668_v55 }
  0x6a   : > { %2064 = vmatprep.subr.bf16.mxu0 %v2675_v56  ;;  %2096 = vmatprep.subr.bf16.mxu1 %v2675_v56 }
  0x6d   : > { %2065 = vmatpush3.bf16.msra.mxu0 %v2675_v56  ;;  %2097 = vmatpush3.bf16.msra.mxu1 %v2675_v56 }
  0x6e   : > { %2066 = vmatprep.subr.bf16.mxu0 %v2682_v57  ;;  %2098 = vmatprep.subr.bf16.mxu1 %v2682_v57 }
  0x71   : > { %2067 = vmatpush3.bf16.msra.mxu0 %v2682_v57  ;;  %2099 = vmatpush3.bf16.msra.mxu1 %v2682_v57 }
  0x72   : > { %2068 = vmatprep.subr.bf16.mxu0 %v2689_v58  ;;  %2100 = vmatprep.subr.bf16.mxu1 %v2689_v58 }
  0x75   : > { %2069 = vmatpush3.bf16.msra.mxu0 %v2689_v58  ;;  %2101 = vmatpush3.bf16.msra.mxu1 %v2689_v58 }
  0x76   : > { %2118 = vmatprep.subr.bf16.mxu0 %v2330_v59  ;;  %2138 = vmatprep.subr.bf16.mxu1 %v2332_v11 }
  0x78   : > { %2071 = vmatmul.mubr.bf16.vlgmr.msra.gmra.mxu0 %v2316_v60  ;;  %2103 = vmatmul.mubr.bf16.vlgmr.msra.gmra.mxu1 %v2317_v61 }
  0x79   : > { %2074 = vmatprep.mubr.bf16.mxu0 %v2318_v62  ;;  %2106 = vmatprep.mubr.bf16.mxu1 %v2319_v63 }
  0x7a   : > { %2119 = vmatpush3.bf16.msra.mxu0 %v2330_v59  ;;  %2139 = vmatpush3.bf16.msra.mxu1 %v2332_v11 }
  0x7b   : > { %2120 = vmatprep.subr.bf16.mxu0 %v2331_v0  ;;  %2140 = vmatprep.subr.bf16.mxu1 %v2333_v12 }
  0x7e   : > { %2121 = vmatpush3.bf16.msra.mxu0 %v2331_v0  ;;  %2141 = vmatpush3.bf16.msra.mxu1 %v2333_v12  ;;  %v2334_v0 = vld [vmem:[%s2620_s29 + $0x80] sm:$0xff]  }
  0x7f   : > { %2158 = vmatprep.subr.bf16.mxu0 %v2640_v49 }
  0x80   : > { %2075 = vmatmul.mubr.bf16.gmra.mxu0 %v2320_v1  ;;  %2107 = vmatmul.mubr.bf16.gmra.mxu1 %v2321_v2  ;;  %v2337_v2 = vld [vmem:[%s2620_s29 + $0x98] sm:$0xff]  }
  0x81   : > { %2078 = vmatprep.mubr.bf16.mxu0 %v2322_v3  ;;  %2110 = vmatprep.mubr.bf16.mxu1 %v2323_v4  ;;  %v2338_v3 = vld [vmem:[%s2620_s29 + $0xa0] sm:$0xff]   ;;  %v2339_v4 = vld [vmem:[%s2620_s29 + $0xa8] sm:$0xff]  }
  0x88   : > { %2079 = vmatmul.mubr.bf16.gmra.mxu0 %v2324_v5  ;;  %2111 = vmatmul.mubr.bf16.gmra.mxu1 %v2325_v6  ;;  %v2340_v5 = vld [vmem:[%s2620_s29 + $0xb0] sm:$0xff]   ;;  %v2341_v6 = vld [vmem:[%s2620_s29 + $0xb8] sm:$0xff]  }
  0x89   : > { %2082 = vmatprep.mubr.bf16.mxu0 %v2326_v7  ;;  %2114 = vmatprep.mubr.bf16.mxu1 %v2327_v8 }
  0x90   : > { %2083 = vmatmul.mubr.bf16.gmra.mxu0 %v2328_v9  ;;  %2115 = vmatmul.mubr.bf16.gmra.mxu1 %v2329_v10 }
 0x138   : > { %v2072_v13 = vpop.f32.mrf.mxu0  ;;  %v2104_v14 = vpop.f32.mrf.mxu1 }
 0x13a   : > { %v717_v15 = vpop.f32.mrf.mxu0  ;;  %v891_v16 = vpop.f32.mrf.mxu1 }
 0x13c   : > { %v2073_v17 = vpop.f32.mrf.mxu0  ;;  %v2105_v18 = vpop.f32.mrf.mxu1 }
 0x13d   : > { %v781_v19 = vpack.c.bf16 %v2073_v17, %v2072_v13  ;;  %v955_v24 = vpack.c.bf16 %v2105_v18, %v2104_v14 }
 0x13e   : > { %v720_v20 = vpop.f32.mrf.mxu0  ;;  %v894_v21 = vpop.f32.mrf.mxu1 }
 0x13f   : > { %v780_v22 = vpack.c.bf16 %v720_v20, %v717_v15  ;;  %v954_v23 = vpack.c.bf16 %v894_v21, %v891_v16 }
 0x140   : > { %v2076_v25 = vpop.f32.mrf.mxu0  ;;  %v2108_v26 = vpop.f32.mrf.mxu1 }
 0x141   : > { %2122 = vmatprep.mubr.msk.bf16.mxu0 %vm979_vm1, %v954_v23  ;;  %2142 = vmatprep.mubr.msk.bf16.mxu1 %vm979_vm1, %v780_v22 }
 0x142   : > { %v733_v27 = vpop.f32.mrf.mxu0  ;;  %v907_v28 = vpop.f32.mrf.mxu1  ;;  %2123 = vmatmul.mubr.msk.bf16.vlgmr.msra.gmra.mxu0 %vm979_vm1, %v955_v24  ;;  %2143 = vmatmul.mubr.msk.bf16.vlgmr.msra.gmra.mxu1 %vm979_vm1, %v781_v19 }
 0x143   : > { %2159 = vmatpush3.bf16.msra.mxu0 %v2640_v49 }
 0x144   : > { %v2077_v29 = vpop.f32.mrf.mxu0  ;;  %v2109_v30 = vpop.f32.mrf.mxu1  ;;  %2160 = vmatprep.subr.bf16.mxu0 %v2643_v50 }
 0x145   : > { %v783_v31 = vpack.c.bf16 %v2077_v29, %v2076_v25  ;;  %v957_v36 = vpack.c.bf16 %v2109_v30, %v2108_v26 }
 0x146   : > { %v736_v32 = vpop.f32.mrf.mxu0  ;;  %v910_v33 = vpop.f32.mrf.mxu1 }
 0x147   : > { %v782_v34 = vpack.c.bf16 %v736_v32, %v733_v27  ;;  %v956_v35 = vpack.c.bf16 %v910_v33, %v907_v28  ;;  %2161 = vmatpush3.bf16.msra.mxu0 %v2643_v50 }
 0x148   : > { %v2080_v37 = vpop.f32.mrf.mxu0  ;;  %v2112_v38 = vpop.f32.mrf.mxu1  ;;  %2162 = vmatprep.subr.bf16.mxu0 %v2652_v51 }
 0x149   : > { %2126 = vmatprep.mubr.msk.bf16.mxu0 %vm979_vm1, %v956_v35  ;;  %2146 = vmatprep.mubr.msk.bf16.mxu1 %vm979_vm1, %v782_v34 }
 0x14a   : > { %v749_v39 = vpop.f32.mrf.mxu0  ;;  %v923_v40 = vpop.f32.mrf.mxu1  ;;  %2127 = vmatmul.mubr.msk.bf16.gmra.mxu0 %vm979_vm1, %v957_v36  ;;  %2147 = vmatmul.mubr.msk.bf16.gmra.mxu1 %vm979_vm1, %v783_v31 }
 0x14b   : > { %2163 = vmatpush3.bf16.msra.mxu0 %v2652_v51 }
 0x14c   : > { %v2081_v41 = vpop.f32.mrf.mxu0  ;;  %v2113_v42 = vpop.f32.mrf.mxu1  ;;  %2164 = vmatprep.subr.bf16.mxu0 %v2657_v52 }
 0x14d   : > { %v785_v43 = vpack.c.bf16 %v2081_v41, %v2080_v37  ;;  %v959_v48 = vpack.c.bf16 %v2113_v42, %v2112_v38 }
 0x14e   : > { %v752_v44 = vpop.f32.mrf.mxu0  ;;  %v926_v45 = vpop.f32.mrf.mxu1 }
 0x14f   : > { %v784_v46 = vpack.c.bf16 %v752_v44, %v749_v39  ;;  %v958_v47 = vpack.c.bf16 %v926_v45, %v923_v40  ;;  %2165 = vmatpush3.bf16.msra.mxu0 %v2657_v52 }
 0x150   : > { %v2084_v49 = vpop.f32.mrf.mxu0  ;;  %v2116_v50 = vpop.f32.mrf.mxu1  ;;  %2166 = vmatprep.subr.bf16.mxu0 %v2668_v55 }
 0x151   : > { %2130 = vmatprep.mubr.msk.bf16.mxu0 %vm979_vm1, %v958_v47  ;;  %2150 = vmatprep.mubr.msk.bf16.mxu1 %vm979_vm1, %v784_v46 }
 0x152   : > { %v765_v51 = vpop.f32.mrf.mxu0  ;;  %v939_v53 = vpop.f32.mrf.mxu1  ;;  %2131 = vmatmul.mubr.msk.bf16.gmra.mxu0 %vm979_vm1, %v959_v48  ;;  %2151 = vmatmul.mubr.msk.bf16.gmra.mxu1 %vm979_vm1, %v785_v43 }
 0x153   : > { %2167 = vmatpush3.bf16.msra.mxu0 %v2668_v55  ;;  %v2335_v55 = vld [vmem:[%s2620_s29 + $0x88] sm:$0xff]  }
 0x154   : > { %v2085_v54 = vpop.f32.mrf.mxu0  ;;  %v2117_v52 = vpop.f32.mrf.mxu1  ;;  %2168 = vmatprep.subr.bf16.mxu0 %v2675_v56 }
 0x155   : > { %v787_v59 = vpack.c.bf16 %v2085_v54, %v2084_v49  ;;  %v961_v1 = vpack.c.bf16 %v2117_v52, %v2116_v50 }
 0x156   : > { %v768_v60 = vpop.f32.mrf.mxu0  ;;  %v942_v61 = vpop.f32.mrf.mxu1 }
 0x157   : > { %v786_v62 = vpack.c.bf16 %v768_v60, %v765_v51  ;;  %v960_v63 = vpack.c.bf16 %v942_v61, %v939_v53  ;;  %2169 = vmatpush3.bf16.msra.mxu0 %v2675_v56  ;;  %v2336_v56 = vld [vmem:[%s2620_s29 + $0x90] sm:$0xff]  }
 0x158   : > { %2170 = vmatprep.subr.bf16.mxu0 %v2682_v57 }
 0x159   : > { %2134 = vmatprep.mubr.msk.bf16.mxu0 %vm979_vm1, %v960_v63  ;;  %2154 = vmatprep.mubr.msk.bf16.mxu1 %vm979_vm1, %v786_v62 }
 0x15a   : > { %2135 = vmatmul.mubr.msk.bf16.gmra.mxu0 %vm979_vm1, %v961_v1  ;;  %2155 = vmatmul.mubr.msk.bf16.gmra.mxu1 %vm979_vm1, %v787_v59 }
 0x15b   : > { %2171 = vmatpush3.bf16.msra.mxu0 %v2682_v57  ;;  %2174 = vmatprep.mubr.bf16.mxu0 %v2334_v0  ;;  %v2342_v57 = vld [vmem:[%s2916_s2 + $0x28] sm:$0xff]  }
 0x15c   : > { %2172 = vmatprep.subr.bf16.mxu0 %v2689_v58  ;;  %2190 = vmatprep.subr.bf16.mxu1 %v2342_v57 }
 0x15d   : > { %2191 = vmatpush3.bf16.msra.mxu1 %v2342_v57  ;;  %v1558_v57 = vld [vmem:[#allocation2] sm:$0xff] }
 0x15f   : > { %2173 = vmatpush3.bf16.msra.mxu0 %v2689_v58  ;;  %v2343_v58 = vld [vmem:[%s2916_s2 + $0x20] sm:$0xff]  }
 0x160   : > { %2192 = vmatprep.subr.bf16.mxu1 %v2343_v58 }
 0x161   : > { %2193 = vmatpush3.bf16.msra.mxu1 %v2343_v58 }
 0x162   : > { %2175 = vmatmul.mubr.bf16.vlgmr.msra.gmra.mxu0 %v2335_v55 }
 0x163   : > { %2178 = vmatprep.mubr.bf16.mxu0 %v2336_v56 }
 0x16a   : > { %2179 = vmatmul.mubr.bf16.gmra.mxu0 %v2337_v2 }
 0x16b   : > { %2182 = vmatprep.mubr.bf16.mxu0 %v2338_v3  ;;  %v1560_v3 = vld [vmem:[#allocation2 + $0x10] sm:$0xff] }
 0x172   : > { %2183 = vmatmul.mubr.bf16.gmra.mxu0 %v2339_v4 }
 0x173   : > { %2186 = vmatprep.mubr.bf16.mxu0 %v2340_v5 }
 0x17a   : > { %2187 = vmatmul.mubr.bf16.gmra.mxu0 %v2341_v6 }
 0x202   : > { %v2769_v7 = vpop.f32.mrf.mxu0  ;;  %v2144_v47 = vpop.f32.mrf.mxu1 }
 0x203   : > { %v1180_v56 = vadd.f32 %v2144_v47, %v2769_v7 }
 0x204   : > { %v2771_v8 = vpop.f32.mrf.mxu0  ;;  %v1171_v48 = vpop.f32.mrf.mxu1 }
 0x205   : > { %v1172_v4 = vadd.f32 %v1171_v48, %v2771_v8 }
 0x206   : > { %v2773_v9 = vpop.f32.mrf.mxu0  ;;  %v2145_v49 = vpop.f32.mrf.mxu1 }
 0x207   : > { %v1183_v58 = vadd.f32 %v2145_v49, %v2773_v9  ;;  %v1564_v9 = vld [vmem:[#allocation2 + $0x30] sm:$0xff] }
 0x208   : > { %v2775_v10 = vpop.f32.mrf.mxu0  ;;  %v1174_v50 = vpop.f32.mrf.mxu1  ;;  %v1568_v49 = vld [vmem:[#allocation2 + $0x50] sm:$0xff] }
 0x20a   : > { %v2777_v11 = vpop.f32.mrf.mxu0  ;;  %v2148_v51 = vpop.f32.mrf.mxu1 }
 0x20c   : > { %v2779_v12 = vpop.f32.mrf.mxu0  ;;  %v1187_v53 = vpop.f32.mrf.mxu1 }
 0x20e   : > { %v2781_v13 = vpop.f32.mrf.mxu0  ;;  %v2149_v54 = vpop.f32.mrf.mxu1 }
 0x210   : > { %v2783_v14 = vpop.f32.mrf.mxu0  ;;  %v1190_v52 = vpop.f32.mrf.mxu1 }
 0x212   : > { %v2785_v15 = vpop.f32.mrf.mxu0  ;;  %v2152_v59 = vpop.f32.mrf.mxu1 }
 0x214   : > { %v2787_v16 = vpop.f32.mrf.mxu0  ;;  %v1203_v60 = vpop.f32.mrf.mxu1 }
 0x216   : > { %v2789_v17 = vpop.f32.mrf.mxu0  ;;  %v2153_v61 = vpop.f32.mrf.mxu1 }
 0x218   : > { %v2791_v18 = vpop.f32.mrf.mxu0  ;;  %v2809_v62 = vpop.f32.mrf.mxu1 }
 0x21a   : > { %v2793_v19 = vpop.f32.mrf.mxu0  ;;  %v2811_v63 = vpop.f32.mrf.mxu1 }
 0x21c   : > { %v2795_v20 = vpop.f32.mrf.mxu0  ;;  %v2813_v0 = vpop.f32.mrf.mxu1 }
 0x21e   : > { %v2797_v21 = vpop.f32.mrf.mxu0  ;;  %v2815_v1 = vpop.f32.mrf.mxu1 }
 0x220   : > { %v2799_v22 = vpop.f32.mrf.mxu0  ;;  %v2817_v55 = vpop.f32.mrf.mxu1 }
 0x222   : > { %v2176_v23 = vpop.f32.mrf.mxu0 }
 0x224   : > { %v1333_v24 = vpop.f32.mrf.mxu0 }
 0x226   : > { %v2177_v25 = vpop.f32.mrf.mxu0 }
 0x227   : > { %v1397_v28 = vpack.c.bf16 %v2177_v25, %v2176_v23 }
 0x228   : > { %v1336_v26 = vpop.f32.mrf.mxu0 }
 0x229   : > { %v1396_v27 = vpack.c.bf16 %v1336_v26, %v1333_v24  ;;  %v1561_v26 = vld [vmem:[#allocation2 + $0x18] sm:$0xff] }
 0x22a   : > { %v2180_v29 = vpop.f32.mrf.mxu0 }
 0x22b   : > { %2194 = vmatprep.mubr.msk.bf16.mxu1 %vm979_vm1, %v1396_v27  ;;  %v1175_v27 = vadd.f32 %v1174_v50, %v2775_v10  ;;  %v1204_v50 = vadd.f32 %v1203_v60, %v2787_v16 }
 0x22c   : > { %v1349_v30 = vpop.f32.mrf.mxu0  ;;  %2195 = vmatmul.mubr.msk.bf16.vlgmr.msra.gmra.mxu1 %vm979_vm1, %v1397_v28 }
 0x22e   : > { %v2181_v31 = vpop.f32.mrf.mxu0 }
 0x22f   : > { %v1399_v34 = vpack.c.bf16 %v2181_v31, %v2180_v29  ;;  %v1196_v31 = vadd.f32 %v2148_v51, %v2777_v11 }
 0x230   : > { %v1352_v32 = vpop.f32.mrf.mxu0 }
 0x231   : > { %v1398_v33 = vpack.c.bf16 %v1352_v32, %v1349_v30  ;;  %v1559_v30 = vld [vmem:[#allocation2 + $0x8] sm:$0xff] }
 0x232   : > { %v2184_v35 = vpop.f32.mrf.mxu0 }
 0x233   : > { %2198 = vmatprep.mubr.msk.bf16.mxu1 %vm979_vm1, %v1398_v33 }
 0x234   : > { %v1365_v36 = vpop.f32.mrf.mxu0  ;;  %2199 = vmatmul.mubr.msk.bf16.gmra.mxu1 %vm979_vm1, %v1399_v34  ;;  %v1188_v34 = vadd.f32 %v1187_v53, %v2779_v12 }
 0x236   : > { %v2185_v37 = vpop.f32.mrf.mxu0 }
 0x237   : > { %v1401_v40 = vpack.c.bf16 %v2185_v37, %v2184_v35  ;;  %v1562_v37 = vld [vmem:[#allocation2 + $0x20] sm:$0xff] }
 0x238   : > { %v1368_v38 = vpop.f32.mrf.mxu0 }
 0x239   : > { %v1400_v39 = vpack.c.bf16 %v1368_v38, %v1365_v36  ;;  %v1199_v38 = vadd.f32 %v2149_v54, %v2781_v13  ;;  %v1566_v54 = vld [vmem:[#allocation2 + $0x40] sm:$0xff] }
 0x23a   : > { %v2188_v41 = vpop.f32.mrf.mxu0 }
 0x23b   : > { %2202 = vmatprep.mubr.msk.bf16.mxu1 %vm979_vm1, %v1400_v39 }
 0x23c   : > { %v1381_v42 = vpop.f32.mrf.mxu0  ;;  %2203 = vmatmul.mubr.msk.bf16.gmra.mxu1 %vm979_vm1, %v1401_v40 }
 0x23e   : > { %v2189_v43 = vpop.f32.mrf.mxu0 }
 0x23f   : > { %v1403_v46 = vpack.c.bf16 %v2189_v43, %v2188_v41  ;;  %v1565_v41 = vld [vmem:[#allocation2 + $0x38] sm:$0xff] }
 0x240   : > { %v1384_v44 = vpop.f32.mrf.mxu0 }
 0x241   : > { %v1402_v45 = vpack.c.bf16 %v1384_v44, %v1381_v42  ;;  %v1191_v42 = vadd.f32 %v1190_v52, %v2783_v14  ;;  %v1215_v52 = vadd.f32 %v2153_v61, %v2789_v17 }
 0x243   : > { %2206 = vmatprep.mubr.msk.bf16.mxu1 %vm979_vm1, %v1402_v45  ;;  %v1563_v45 = vld [vmem:[#allocation2 + $0x28] sm:$0xff] }
 0x244   : > { %2207 = vmatmul.mubr.msk.bf16.gmra.mxu1 %vm979_vm1, %v1403_v46  ;;  %v1212_v46 = vadd.f32 %v2152_v59, %v2785_v15 }
 0x2ec   : > { %v2196_v2 = vpop.f32.mrf.mxu1 }
 0x2ed   : > { %v1544_v5 = vadd.f32 %v2196_v2, %v1180_v56  ;;  %v1569_v2 = vld [vmem:[#allocation2 + $0x58] sm:$0xff] }
 0x2ee   : > { %v1479_v6 = vpop.f32.mrf.mxu1 }
 0x2ef   : > { %v1576_v23 = vadd.f32 %v1560_v3, %v1544_v5  ;;  %v1542_v24 = vadd.f32 %v1479_v6, %v1172_v4  ;;  %v1207_v3 = vadd.f32 %v2809_v62, %v2791_v18  ;;  %v1567_v5 = vld [vmem:[#allocation2 + $0x48] sm:$0xff]  ;;  %v1228_v6 = vadd.f32 %v2811_v63, %v2793_v19 }
 0x2f0   : > { %v2197_v25 = vpop.f32.mrf.mxu1 }
 0x2f1   : > { %1592 = vst.msk [vmem:[#allocation2 + $0x10] sm:$0xff] %vm979_vm1, %v1576_v23  ;;  %v1574_v28 = vadd.f32 %v1558_v57, %v1542_v24  ;;  %v1545_v29 = vadd.f32 %v2197_v25, %v1183_v58  ;;  %v1572_v58 = vld [vmem:[#allocation2 + $0x70] sm:$0xff]  ;;  %v1220_v23 = vadd.f32 %v2813_v0, %v2795_v20  ;;  %v1570_v25 = vld [vmem:[#allocation2 + $0x60] sm:$0xff] }
 0x2f2   : > { %v1482_v7 = vpop.f32.mrf.mxu1 }
 0x2f3   : > { %1590 = vst.msk [vmem:[#allocation2] sm:$0xff] %vm979_vm1, %v1574_v28  ;;  %v1577_v8 = vadd.f32 %v1561_v26, %v1545_v29  ;;  %v1543_v32 = vadd.f32 %v1482_v7, %v1175_v27  ;;  %v1231_v26 = vadd.f32 %v2815_v1, %v2797_v21  ;;  %v1573_v28 = vld [vmem:[#allocation2 + $0x78] sm:$0xff]  ;;  %v1223_v29 = vadd.f32 %v2817_v55, %v2799_v22 }
 0x2f4   : > { %v2200_v33 = vpop.f32.mrf.mxu1 }
 0x2f5   : > { %1593 = vst.msk [vmem:[#allocation2 + $0x18] sm:$0xff] %vm979_vm1, %v1577_v8  ;;  %v1575_v35 = vadd.f32 %v1559_v30, %v1543_v32  ;;  %v1548_v10 = vadd.f32 %v2200_v33, %v1196_v31  ;;  %v1571_v30 = vld [vmem:[#allocation2 + $0x68] sm:$0xff] }
 0x2f6   : > { %v1495_v36 = vpop.f32.mrf.mxu1 }
 0x2f7   : > { %1591 = vst.msk [vmem:[#allocation2 + $0x8] sm:$0xff] %vm979_vm1, %v1575_v35  ;;  %v1580_v39 = vadd.f32 %v1564_v9, %v1548_v10  ;;  %v1546_v11 = vadd.f32 %v1495_v36, %v1188_v34 }
 0x2f8   : > { %v2201_v40 = vpop.f32.mrf.mxu1 }
 0x2f9   : > { %1596 = vst.msk [vmem:[#allocation2 + $0x30] sm:$0xff] %vm979_vm1, %v1580_v39  ;;  %v1578_v43 = vadd.f32 %v1562_v37, %v1546_v11  ;;  %v1549_v12 = vadd.f32 %v2201_v40, %v1199_v38 }
 0x2fa   : > { %v1498_v44 = vpop.f32.mrf.mxu1 }
 0x2fb   : > { %1594 = vst.msk [vmem:[#allocation2 + $0x20] sm:$0xff] %vm979_vm1, %v1578_v43  ;;  %v1581_v47 = vadd.f32 %v1565_v41, %v1549_v12  ;;  %v1547_v13 = vadd.f32 %v1498_v44, %v1191_v42 }
 0x2fc   : > { %v2204_v48 = vpop.f32.mrf.mxu1 }
 0x2fd   : > { %1597 = vst.msk [vmem:[#allocation2 + $0x38] sm:$0xff] %vm979_vm1, %v1581_v47  ;;  %v1579_v51 = vadd.f32 %v1563_v45, %v1547_v13  ;;  %v1552_v14 = vadd.f32 %v2204_v48, %v1212_v46 }
 0x2fe   : > { %v1511_v53 = vpop.f32.mrf.mxu1 }
 0x2ff   : > { %1595 = vst.msk [vmem:[#allocation2 + $0x28] sm:$0xff] %vm979_vm1, %v1579_v51  ;;  %v1584_v56 = vadd.f32 %v1568_v49, %v1552_v14  ;;  %v1550_v15 = vadd.f32 %v1511_v53, %v1204_v50 }
 0x300   : > { %v2205_v59 = vpop.f32.mrf.mxu1 }
 0x301   : > { %1600 = vst.msk [vmem:[#allocation2 + $0x50] sm:$0xff] %vm979_vm1, %v1584_v56  ;;  %v1582_v16 = vadd.f32 %v1566_v54, %v1550_v15  ;;  %v1553_v60 = vadd.f32 %v2205_v59, %v1215_v52 }
 0x302   : > { %v1514_v4 = vpop.f32.mrf.mxu1 }
 0x303   : > { %1598 = vst.msk [vmem:[#allocation2 + $0x40] sm:$0xff] %vm979_vm1, %v1582_v16  ;;  %v1585_v17 = vadd.f32 %v1569_v2, %v1553_v60  ;;  %v1551_v61 = vadd.f32 %v1514_v4, %v1207_v3 }
 0x304   : > { %v2208_v57 = vpop.f32.mrf.mxu1 }
 0x305   : > { %1601 = vst.msk [vmem:[#allocation2 + $0x58] sm:$0xff] %vm979_vm1, %v1585_v17  ;;  %v1583_v18 = vadd.f32 %v1567_v5, %v1551_v61  ;;  %v1556_v62 = vadd.f32 %v2208_v57, %v1228_v6 }
 0x306   : > { %v1527_v24 = vpop.f32.mrf.mxu1 }
 0x307   : > { %1599 = vst.msk [vmem:[#allocation2 + $0x48] sm:$0xff] %vm979_vm1, %v1583_v18  ;;  %v1588_v19 = vadd.f32 %v1572_v58, %v1556_v62  ;;  %v1554_v63 = vadd.f32 %v1527_v24, %v1220_v23 }
 0x308   : > { %v2209_v27 = vpop.f32.mrf.mxu1 }
 0x309   : > { %1604 = vst.msk [vmem:[#allocation2 + $0x70] sm:$0xff] %vm979_vm1, %v1588_v19  ;;  %v1586_v20 = vadd.f32 %v1570_v25, %v1554_v63  ;;  %v1557_v0 = vadd.f32 %v2209_v27, %v1231_v26 }
 0x30a   : > { %v1530_v7 = vpop.f32.mrf.mxu1 }
 0x30b   : > { %1602 = vst.msk [vmem:[#allocation2 + $0x60] sm:$0xff] %vm979_vm1, %v1586_v20  ;;  %v1589_v31 = vadd.f32 %v1573_v28, %v1557_v0  ;;  %v1555_v8 = vadd.f32 %v1530_v7, %v1223_v29  ;;  %1609 = sbr.rel (%p1955_p0) target bundleno = 1017 (0x3f9), region = 89 }
 0x30d   : > { %1605 = vst.msk [vmem:[#allocation2 + $0x78] sm:$0xff] %vm979_vm1, %v1589_v31  ;;  %v1587_v21 = vadd.f32 %v1571_v30, %v1555_v8 }
 0x30f   : > { %1603 = vst.msk [vmem:[#allocation2 + $0x68] sm:$0xff] %vm979_vm1, %v1587_v21 }
 0x310   : > { %v1641_v22 = vld [vmem:[%s2607_s12 + $0x78] sm:$0xff]  ;;  %v1624_v55 = vld [vmem:[#allocation2 + $0x70] sm:$0xff]  ;;  %v2401_v32 = vmov 0.0   ;;  %v1639_v35 = vld [vmem:[%s2607_s12 + $0x68] sm:$0xff]  ;;  %vm2402_vm2 = vmmov 0  }
 0x311   : > { %2210 = vmatprep.subr.mxu0 %v2401_v32  ;;  %v1640_v9 = vld [vmem:[%s2607_s12 + $0x70] sm:$0xff]  ;;  %2242 = vmatprep.mubr.msk.f32.mxu0 %vm2402_vm2, %v2401_v32  ;;  %v1638_v37 = vld [vmem:[%s2607_s12 + $0x60] sm:$0xff]  ;;  %v1621_v39 = vld [vmem:[#allocation2 + $0x58] sm:$0xff] }
 0x312   : > { %v1656_v10 = vadd.f32 %v1640_v9, %v1624_v55  ;;  %v1622_v36 = vld [vmem:[#allocation2 + $0x60] sm:$0xff]  ;;  %v1637_v11 = vld [vmem:[%s2607_s12 + $0x58] sm:$0xff]  ;;  %v1620_v41 = vld [vmem:[#allocation2 + $0x50] sm:$0xff] }
 0x313   : > { %v1654_v40 = vadd.f32 %v1638_v37, %v1622_v36  ;;  %v1636_v42 = vld [vmem:[%s2607_s12 + $0x50] sm:$0xff]  ;;  %v1653_v43 = vadd.f32 %v1637_v11, %v1621_v39  ;;  %v1619_v12 = vld [vmem:[#allocation2 + $0x48] sm:$0xff]  ;;  %v1618_v46 = vld [vmem:[#allocation2 + $0x40] sm:$0xff] }
 0x314   : > { %v1625_v1 = vld [vmem:[#allocation2 + $0x78] sm:$0xff]  ;;  %v1635_v44 = vld [vmem:[%s2607_s12 + $0x48] sm:$0xff]  ;;  %v1652_v45 = vadd.f32 %v1636_v42, %v1620_v41  ;;  %v1634_v47 = vld [vmem:[%s2607_s12 + $0x40] sm:$0xff] }
 0x315   : > { %v1657_v33 = vadd.f32 %v1641_v22, %v1625_v1  ;;  %v1651_v13 = vadd.f32 %v1635_v44, %v1619_v12  ;;  %v1617_v48 = vld [vmem:[#allocation2 + $0x38] sm:$0xff]  ;;  %v1650_v50 = vadd.f32 %v1634_v47, %v1618_v46  ;;  %v1616_v51 = vld [vmem:[#allocation2 + $0x30] sm:$0xff]  ;;  %v1615_v54 = vld [vmem:[#allocation2 + $0x28] sm:$0xff] }
 0x316   : > { %v1623_v34 = vld [vmem:[#allocation2 + $0x68] sm:$0xff]  ;;  %v1633_v49 = vld [vmem:[%s2607_s12 + $0x38] sm:$0xff]  ;;  %v1632_v14 = vld [vmem:[%s2607_s12 + $0x30] sm:$0xff] }
 0x317   : > { %2211 = vmatpush3.msra.mxu0 %v1657_v33  ;;  %v1655_v38 = vadd.f32 %v1639_v35, %v1623_v34  ;;  %v1649_v53 = vadd.f32 %v1633_v49, %v1617_v48  ;;  %v1631_v52 = vld [vmem:[%s2607_s12 + $0x28] sm:$0xff]  ;;  %v1648_v56 = vadd.f32 %v1632_v14, %v1616_v51  ;;  %v1614_v15 = vld [vmem:[#allocation2 + $0x20] sm:$0xff]  ;;  %v1613_v3 = vld [vmem:[#allocation2 + $0x18] sm:$0xff] }
 0x318   : > { %2212 = vmatprep.subr.mxu0 %v2401_v32  ;;  %v1630_v59 = vld [vmem:[%s2607_s12 + $0x20] sm:$0xff]  ;;  %v1647_v2 = vadd.f32 %v1631_v52, %v1615_v54  ;;  %v1629_v16 = vld [vmem:[%s2607_s12 + $0x18] sm:$0xff]  ;;  %v1612_v4 = vld [vmem:[#allocation2 + $0x10] sm:$0xff] }
 0x319   : > { %2213 = vmatpush3.msra.mxu0 %v1656_v10  ;;  %v1646_v60 = vadd.f32 %v1630_v59, %v1614_v15  ;;  %v1628_v5 = vld [vmem:[%s2607_s12 + $0x10] sm:$0xff]  ;;  %v1645_v6 = vadd.f32 %v1629_v16, %v1613_v3  ;;  %v1611_v17 = vld [vmem:[#allocation2 + $0x8] sm:$0xff]  ;;  %v1610_v58 = vld [vmem:[#allocation2] sm:$0xff] }
 0x31a   : > { %2214 = vmatprep.subr.mxu0 %v2401_v32  ;;  %v1627_v61 = vld [vmem:[%s2607_s12 + $0x8] sm:$0xff]  ;;  %v1644_v57 = vadd.f32 %v1628_v5, %v1612_v4  ;;  %v1626_v23 = vld [vmem:[%s2607_s12] sm:$0xff] }
 0x31b   : > { %2215 = vmatpush3.msra.mxu0 %v1655_v38  ;;  %v1643_v18 = vadd.f32 %v1627_v61, %v1611_v17  ;;  %v1642_v62 = vadd.f32 %v1626_v23, %v1610_v58  ;;  %v1658_v24 = vld [vmem:[%s2613_s15] sm:$0xff] }
 0x31c   : > { %2216 = vmatprep.subr.mxu0 %v2401_v32 }
 0x31d   : > { %2217 = vmatpush3.msra.mxu0 %v1654_v40 }
 0x31e   : > { %2218 = vmatprep.subr.mxu0 %v2401_v32 }
 0x31f   : > { %2219 = vmatpush3.msra.mxu0 %v1653_v43 }
 0x320   : > { %2220 = vmatprep.subr.mxu0 %v2401_v32 }
 0x321   : > { %2221 = vmatpush3.msra.mxu0 %v1652_v45 }
 0x322   : > { %2222 = vmatprep.subr.mxu0 %v2401_v32 }
 0x323   : > { %2223 = vmatpush3.msra.mxu0 %v1651_v13 }
 0x324   : > { %2224 = vmatprep.subr.mxu0 %v2401_v32 }
 0x325   : > { %2225 = vmatpush3.msra.mxu0 %v1650_v50 }
 0x326   : > { %2226 = vmatprep.subr.mxu0 %v2401_v32 }
 0x327   : > { %2227 = vmatpush3.msra.mxu0 %v1649_v53 }
 0x328   : > { %2228 = vmatprep.subr.mxu0 %v2401_v32 }
 0x329   : > { %2229 = vmatpush3.msra.mxu0 %v1648_v56 }
 0x32a   : > { %2230 = vmatprep.subr.mxu0 %v2401_v32 }
 0x32b   : > { %2231 = vmatpush3.msra.mxu0 %v1647_v2 }
 0x32c   : > { %2232 = vmatprep.subr.mxu0 %v2401_v32 }
 0x32d   : > { %2233 = vmatpush3.msra.mxu0 %v1646_v60 }
 0x32e   : > { %2234 = vmatprep.subr.mxu0 %v2401_v32 }
 0x32f   : > { %2235 = vmatpush3.msra.mxu0 %v1645_v6 }
 0x330   : > { %2236 = vmatprep.subr.mxu0 %v2401_v32 }
 0x331   : > { %2237 = vmatpush3.msra.mxu0 %v1644_v57 }
 0x332   : > { %2238 = vmatprep.subr.mxu0 %v2401_v32 }
 0x333   : > { %2239 = vmatpush3.msra.mxu0 %v1643_v18 }
 0x334   : > { %2240 = vmatprep.subr.mxu0 %v2401_v32 }
 0x335   : > { %2241 = vmatpush3.msra.mxu0 %v1642_v62 }
 0x336   : > { %2243 = vmatmul.mubr.f32.vlgmr.msra.gmra.mxu0 %v1658_v24 }
 0x3f6   : > { %v1725_v25 = vpop.f32.mrf.mxu0 }
 0x3f7   : > { %1729 = vst.msk [vmem:[%s2618_s0] sm:$0xff] %vm979_vm1, %v1725_v25 }
 0x3f8   : > { %v2244_v26 = vpop.f32.mrf.mxu0 }
 0x3f9 PF: > { %s15_s24 = sadd.s32 1, %s2398_s24   ;;  %s2922_s18 = smov %s2378_s19 }
 0x3fa   : > { %p12_p1 = scmp.ge.s32.totalorder %s15_s24, 6   ;;  %s2923_s19 = smov %s2484_s6 }
 0x3fb   : > { %s2924_s20 = smov %s2390_s22  ;;  %s2925_s21 = smov %s2394_s23 }
 0x3fc   : > { %s2926_s22 = smov %s2929_s25  ;;  %s2927_s23 = smov %s2933_s26 }
 0x3fd   :  { %14 = sbr.rel (!%p12_p1) target bundleno = 6 (0x6), region = 137 }

</bundles_post_ra>
